<compile_context>
chip_gen: v7x
topology: tpu7x:2x2x1
jax: 0.10.0
libtpu: 0.0.40
codegen_flags: <defaults>
</compile_context>

<pallas_src>
import jax
import jax.numpy as jnp
from jax.experimental import pallas as pl
from jax.experimental.pallas import tpu as pltpu


# ---------------------------------------------------------------------------
# Fused kernel: one (batch, row-tile) step of the whole block
# ---------------------------------------------------------------------------

def _fused_block_kernel(x_ref, w1_ref, s1_ref, b1_ref,
                        dw_ref, s2_ref, b2_ref,
                        w3_ref, s3_ref, b3_ref,
                        o_ref, hpad_ref):
    """
    x_ref   : (1, H, W, CinP)      full input plane of this batch element (bf16)
    w1_ref  : (CinP, HP)           expand 1x1 weight (bf16, zero-padded)
    dw_ref  : (9, HP)              depthwise 3x3 weight (f32, zero-padded)
    w3_ref  : (HP, CoutP)          project 1x1 weight (bf16, zero-padded)
    s*/b*   : (1, C)               folded BN scale / shift (f32, zero-padded)
    o_ref   : (1, TH, W, CoutP)    output row-tile (f32, lane-dense)
    hpad_ref: (TH+2, W+2, HP)      VMEM scratch: zero-padded hidden activation
    """
    t = pl.program_id(1)
    num_t = pl.num_programs(1)
    _, H, W, CinP = x_ref.shape
    _, TH, _, CoutP = o_ref.shape
    HP = hpad_ref.shape[-1]

    # ---- hoisted loads (once per grid step, not per 3x3 tap) ----
    w1 = w1_ref[...]               # (CinP, HP)  bf16
    s1 = s1_ref[...]               # (1, HP)     f32
    b1 = b1_ref[...]
    w_dw = dw_ref[...]             # (9, HP)     f32
    s2 = s2_ref[0]                 # (HP,)
    b2 = b2_ref[0]
    w3 = w3_ref[...]               # (HP, CoutP) bf16
    s3 = s3_ref[...]               # (1, CoutP)
    b3 = b3_ref[...]

    def expand(rows_2d_bf16):      # (R, CinP) bf16 -> (R, HP) f32 : 1x1 + BN + ReLU
        y = jnp.dot(rows_2d_bf16, w1, preferred_element_type=jnp.float32)
        return jnp.maximum(y * s1 + b1, 0.0)

    r0 = pl.multiple_of(t * TH, TH)          # first output row of this tile

    # ---- Stage 1: expand 1x1 conv into the padded VMEM scratch ----
    # Zero ONLY the left/right padding columns (not the whole scratch); the
    # interior + halo rows are fully overwritten below.  (Re-zeroed every step
    # because the scratch may be per-core when the grid is sharded.)
    zcol = jnp.zeros((TH + 2, 1, HP), jnp.float32)
    hpad_ref[:, 0:1, :] = zcol
    hpad_ref[:, W + 1:W + 2, :] = zcol

    x_mid = x_ref[:, pl.ds(r0, TH), :, :]               # (1, TH, W, CinP) bf16
    x_mid2d = x_mid.reshape(TH * W, CinP)
    h_mid = expand(x_mid2d).reshape(TH, W, HP)
    hpad_ref[1:TH + 1, 1:W + 1, :] = h_mid

    @pl.when(t > 0)                                     # top halo row (recompute)
    def _():
        x_top = x_ref[:, pl.ds(r0 - 1, 1), :, :]
        hpad_ref[0:1, 1:W + 1, :] = expand(
            x_top.reshape(W, CinP)).reshape(1, W, HP)

    @pl.when(t == 0)                                    # top image border -> zeros
    def _():
        hpad_ref[0:1, 1:W + 1, :] = jnp.zeros((1, W, HP), jnp.float32)

    @pl.when(t < num_t - 1)                             # bottom halo row (recompute)
    def _():
        x_bot = x_ref[:, pl.ds(r0 + TH, 1), :, :]
        hpad_ref[TH + 1:TH + 2, 1:W + 1, :] = expand(
            x_bot.reshape(W, CinP)).reshape(1, W, HP)

    @pl.when(t == num_t - 1)                            # bottom image border -> zeros
    def _():
        hpad_ref[TH + 1:TH + 2, 1:W + 1, :] = jnp.zeros((1, W, HP), jnp.float32)

    # ---- Stage 2: 3x3 depthwise (stride 1, pad 1) + BN + ReLU (f32 on the VPU) ----
    # Read each shifted window directly from the ref so the offsets fold into
    # the load address (no full-scratch materialization / relayout copies).
    acc = hpad_ref[0:TH, 0:W, :] * w_dw[0]
    for k in range(1, 9):
        ki, kj = k // 3, k % 3
        acc = acc + hpad_ref[ki:ki + TH, kj:kj + W, :] * w_dw[k]
    d = jnp.maximum(acc * s2 + b2, 0.0)

    # ---- Stage 3: project 1x1 conv + BN + residual add ----
    y = jnp.dot(d.reshape(TH * W, HP).astype(jnp.bfloat16), w3,
                preferred_element_type=jnp.float32)
    y = y * s3 + b3
    res = x_mid2d.astype(jnp.float32)                   # CinP == CoutP on residual path
    o_ref[...] = (y + res).reshape(1, TH, W, CoutP).astype(o_ref.dtype)


# ---------------------------------------------------------------------------
# Wrapper
# ---------------------------------------------------------------------------

def _round_up(x, m):
    return (x + m - 1) // m * m


def _pick_row_tile(H, W, hidden_p, vmem_budget_bytes):
    """Largest divisor of H whose tile footprint fits the budget, stopping once
    the matmul M (TH*W) is comfortably large."""
    best = 1
    for d in range(1, H + 1):
        if H % d:
            continue
        scratch = (d + 2) * (W + 2) * hidden_p * 4       # hpad scratch
        live = 3 * d * W * hidden_p * 4                  # acc/d/h_mid working values
        if scratch + live > vmem_budget_bytes:
            break
        best = d
        if d * W >= 512:
            break
    return best


def inverted_residual(x_nchw, params, *, row_tile=None):
    """Fused forward pass. x_nchw: (N, Cin, H, W) f32. Returns (N, Cout, H, W) f32."""
    w1, s1, b1, dw, s2, b2, w3, s3, b3 = params
    N, Cin, H, W = x_nchw.shape
    hidden = w1.shape[1]
    Cout = w3.shape[1]
    assert Cin == Cout, "residual path requires inp == oup (stride == 1)"

    # ---- lane-dense channel padding (zero padding keeps padded lanes at 0) ----
    CinP = _round_up(Cin, 128)
    HP = _round_up(hidden, 128)
    CoutP = _round_up(Cout, 128)
    assert CinP == CoutP

    w1p = jnp.zeros((CinP, HP), jnp.float32).at[:Cin, :hidden].set(w1).astype(jnp.bfloat16)
    dwp = jnp.zeros((9, HP), jnp.float32).at[:, :hidden].set(dw.reshape(9, hidden))
    w3p = jnp.zeros((HP, CoutP), jnp.float32).at[:hidden, :Cout].set(w3).astype(jnp.bfloat16)

    def padvec(v, n):
        return jnp.zeros((1, n), jnp.float32).at[0, :v.shape[0]].set(v)

    s1p, b1p = padvec(s1, HP), padvec(b1, HP)
    s2p, b2p = padvec(s2, HP), padvec(b2, HP)
    s3p, b3p = padvec(s3, CoutP), padvec(b3, CoutP)

    # channels-last so channels map to the 128-wide lane axis; bf16 input halves
    # DMA bytes (it is cast to bf16 for the MXU anyway).
    x_nhwc = jnp.transpose(x_nchw, (0, 2, 3, 1))
    x_pad = (jnp.zeros((N, H, W, CinP), jnp.float32)
             .at[..., :Cin].set(x_nhwc).astype(jnp.bfloat16))

    # ---- generation-aware VMEM budgeting ----
    try:
        vmem_cap = int(pltpu.get_tpu_info().vmem_capacity_bytes)
    except Exception:
        vmem_cap = 64 * 1024 * 1024          # conservative (v7x per-TC) fallback

    if row_tile is None:
        row_tile = _pick_row_tile(H, W, HP, vmem_budget_bytes=vmem_cap // 4)
    TH = row_tile
    assert H % TH == 0, "row_tile must divide H"

    footprint = (
        2 * H * W * CinP * 2                              # double-buffered input plane (bf16)
        + 2 * TH * W * CoutP * 4                          # double-buffered output tile (f32)
        + 2 * ((CinP * HP + HP * CoutP) * 2               # bf16 matmul weights
               + 9 * HP * 4 + 6 * HP * 4 + 2 * CoutP * 4)  # dw + BN affines
        + (TH + 2) * (W + 2) * HP * 4                     # hidden scratch
    )
    vmem_limit = int(min(max(2 * footprint, 16 * 1024 * 1024), 0.9 * vmem_cap))

    out_pad = pl.pallas_call(
        _fused_block_kernel,
        out_shape=jax.ShapeDtypeStruct((N, H, W, CoutP), jnp.float32),
        grid=(N, H // TH),
        in_specs=[
            pl.BlockSpec((1, H, W, CinP), lambda n, t: (n, 0, 0, 0)),
            pl.BlockSpec((CinP, HP), lambda n, t: (0, 0)),
            pl.BlockSpec((1, HP), lambda n, t: (0, 0)),
            pl.BlockSpec((1, HP), lambda n, t: (0, 0)),
            pl.BlockSpec((9, HP), lambda n, t: (0, 0)),
            pl.BlockSpec((1, HP), lambda n, t: (0, 0)),
            pl.BlockSpec((1, HP), lambda n, t: (0, 0)),
            pl.BlockSpec((HP, CoutP), lambda n, t: (0, 0)),
            pl.BlockSpec((1, CoutP), lambda n, t: (0, 0)),
            pl.BlockSpec((1, CoutP), lambda n, t: (0, 0)),
        ],
        out_specs=pl.BlockSpec((1, TH, W, CoutP), lambda n, t: (n, t, 0, 0)),
        scratch_shapes=[pltpu.VMEM((TH + 2, W + 2, HP), jnp.float32)],
        compiler_params=pltpu.CompilerParams(
            dimension_semantics=("parallel", "parallel"),
            vmem_limit_bytes=vmem_limit),
    )(x_pad, w1p, s1p, b1p, dwp, s2p, b2p, w3p, s3p, b3p)

    out_nhwc = out_pad[..., :Cout]
    return jnp.transpose(out_nhwc, (0, 3, 1, 2))


# ---------------------------------------------------------------------------
# Deterministic parameter init (synthetic; shapes follow the PyTorch __init__)
# ---------------------------------------------------------------------------

def init_params(key, inp, oup, expand_ratio):
    hidden = round(inp * expand_ratio)
    ks = jax.random.split(key, 15)

    def bn_fold(kg, kb, km, kv, c):
        gamma = 1.0 + 0.1 * jax.random.normal(kg, (c,), jnp.float32)
        beta = 0.1 * jax.random.normal(kb, (c,), jnp.float32)
        mean = 0.1 * jax.random.normal(km, (c,), jnp.float32)
        var = jnp.abs(jax.random.normal(kv, (c,), jnp.float32)) + 1.0
        scale = gamma * jax.lax.rsqrt(var + 1e-5)
        shift = beta - mean * scale
        return scale, shift

    w1 = 0.1 * jax.random.normal(ks[0], (inp, hidden), jnp.float32)   # (Cin, hidden)
    s1, b1 = bn_fold(ks[1], ks[2], ks[3], ks[4], hidden)
    dw = 0.1 * jax.random.normal(ks[5], (3, 3, hidden), jnp.float32)  # depthwise 3x3
    s2, b2 = bn_fold(ks[6], ks[7], ks[8], ks[9], hidden)
    w3 = 0.1 * jax.random.normal(ks[10], (hidden, oup), jnp.float32)  # (hidden, Cout)
    s3, b3 = bn_fold(ks[11], ks[12], ks[13], ks[14], oup)
    return (w1, s1, b1, dw, s2, b2, w3, s3, b3)


# Pure-JAX f32 reference (NHWC) for correctness checking.
def _reference(x_nchw, params):
    w1, s1, b1, dw, s2, b2, w3, s3, b3 = params
    x = jnp.transpose(x_nchw, (0, 2, 3, 1))
    N, H, W, _ = x.shape
    h = jnp.maximum(jnp.einsum('nhwc,cd->nhwd', x, w1) * s1 + b1, 0.0)
    hp = jnp.pad(h, ((0, 0), (1, 1), (1, 1), (0, 0)))
    acc = jnp.zeros_like(h)
    for ki in range(3):
        for kj in range(3):
            acc = acc + hp[:, ki:ki + H, kj:kj + W, :] * dw[ki, kj, :]
    d = jnp.maximum(acc * s2 + b2, 0.0)
    y = jnp.einsum('nhwd,de->nhwe', d, w3) * s3 + b3 + x
    return jnp.transpose(y, (0, 3, 1, 2))


if __name__ == "__main__":
    key = jax.random.PRNGKey(0)
    k_x, k_p = jax.random.split(key)

    # Small shapes: batch=2, inp=oup=16, H=W=16, expand_ratio=4 (hidden=64), stride=1.
    N, Cin, H, W = 2, 16, 16, 16
    expand_ratio, Cout = 4, 16

    x = jax.random.normal(k_x, (N, Cin, H, W), jnp.float32)
    params = init_params(k_p, Cin, Cout, expand_ratio)

    # row_tile=8 -> grid (2 batches, 2 row-tiles): exercises the halo-recompute
    # branches while keeping TH*W=128 matmul rows per step.
    out = inverted_residual(x, params, row_tile=8)
    out = jax.block_until_ready(out)

    ref = _reference(x, params)
    assert out.shape == (N, Cout, H, W), out.shape
    # bf16 input + bf16 matmul operands (f32 accumulation) vs f32 reference
    # -> loosened tolerance (inference-precision policy).
    err = float(jnp.max(jnp.abs(out - ref)))
    assert jnp.allclose(out, ref, rtol=2e-2, atol=3e-2), err

    print("KERNEL_OK")
</pallas_src>

<mosaic_0001>
module attributes {stable_mosaic.version = 11 : i64} {
  func.func @_fused_block_kernel(%arg0: i32, %arg1: i32, %arg2: memref<1x16x16x128xbf16, #tpu.memory_space<vmem>>, %arg3: memref<128x128xbf16, #tpu.memory_space<vmem>>, %arg4: memref<1x128xf32, #tpu.memory_space<vmem>>, %arg5: memref<1x128xf32, #tpu.memory_space<vmem>>, %arg6: memref<9x128xf32, #tpu.memory_space<vmem>>, %arg7: memref<1x128xf32, #tpu.memory_space<vmem>>, %arg8: memref<1x128xf32, #tpu.memory_space<vmem>>, %arg9: memref<128x128xbf16, #tpu.memory_space<vmem>>, %arg10: memref<1x128xf32, #tpu.memory_space<vmem>>, %arg11: memref<1x128xf32, #tpu.memory_space<vmem>>, %arg12: memref<1x8x16x128xf32, #tpu.memory_space<vmem>>, %arg13: memref<10x18x128xf32, #tpu.memory_space<vmem>>) attributes {dimension_semantics = [#tpu.dimension_semantics<parallel>, #tpu.dimension_semantics<parallel>], iteration_bounds = array<i64: 2, 2>, scalar_prefetch = 0 : i64, scratch_operands = 1 : i64, tpu.core_type = #tpu.core_type<tc>, window_params = [{transform_indices = @transform_0, window_bounds = array<i64: 1, 16, 16, 128>}, {pipeline_mode = #tpu.pipeline_mode<synchronous>, transform_indices = @transform_1, window_bounds = array<i64: 128, 128>}, {pipeline_mode = #tpu.pipeline_mode<synchronous>, transform_indices = @transform_2, window_bounds = array<i64: 1, 128>}, {pipeline_mode = #tpu.pipeline_mode<synchronous>, transform_indices = @transform_3, window_bounds = array<i64: 1, 128>}, {pipeline_mode = #tpu.pipeline_mode<synchronous>, transform_indices = @transform_4, window_bounds = array<i64: 9, 128>}, {pipeline_mode = #tpu.pipeline_mode<synchronous>, transform_indices = @transform_5, window_bounds = array<i64: 1, 128>}, {pipeline_mode = #tpu.pipeline_mode<synchronous>, transform_indices = @transform_6, window_bounds = array<i64: 1, 128>}, {pipeline_mode = #tpu.pipeline_mode<synchronous>, transform_indices = @transform_7, window_bounds = array<i64: 128, 128>}, {pipeline_mode = #tpu.pipeline_mode<synchronous>, transform_indices = @transform_8, window_bounds = array<i64: 1, 128>}, {pipeline_mode = #tpu.pipeline_mode<synchronous>, transform_indices = @transform_9, window_bounds = array<i64: 1, 128>}, {transform_indices = @transform_10, window_bounds = array<i64: 1, 8, 16, 128>}]} {
    %c0 = arith.constant 0 : index
    %c0_0 = arith.constant 0 : index
    %0 = vector.load %arg3[%c0, %c0_0] : memref<128x128xbf16, #tpu.memory_space<vmem>>, vector<128x128xbf16>
    %c0_1 = arith.constant 0 : index
    %c0_2 = arith.constant 0 : index
    %1 = vector.load %arg4[%c0_1, %c0_2] : memref<1x128xf32, #tpu.memory_space<vmem>>, vector<1x128xf32>
    %c0_3 = arith.constant 0 : index
    %c0_4 = arith.constant 0 : index
    %2 = vector.load %arg5[%c0_3, %c0_4] : memref<1x128xf32, #tpu.memory_space<vmem>>, vector<1x128xf32>
    %c0_5 = arith.constant 0 : index
    %c0_6 = arith.constant 0 : index
    %3 = vector.load %arg6[%c0_5, %c0_6] : memref<9x128xf32, #tpu.memory_space<vmem>>, vector<9x128xf32>
    %c0_7 = arith.constant 0 : index
    %c0_8 = arith.constant 0 : index
    %4 = vector.load %arg7[%c0_7, %c0_8] : memref<1x128xf32, #tpu.memory_space<vmem>>, vector<1x128xf32>
    %5 = vector.shape_cast %4 : vector<1x128xf32> to vector<128xf32>
    %c0_9 = arith.constant 0 : index
    %c0_10 = arith.constant 0 : index
    %6 = vector.load %arg8[%c0_9, %c0_10] : memref<1x128xf32, #tpu.memory_space<vmem>>, vector<1x128xf32>
    %7 = vector.shape_cast %6 : vector<1x128xf32> to vector<128xf32>
    %c0_11 = arith.constant 0 : index
    %c0_12 = arith.constant 0 : index
    %8 = vector.load %arg9[%c0_11, %c0_12] : memref<128x128xbf16, #tpu.memory_space<vmem>>, vector<128x128xbf16>
    %c0_13 = arith.constant 0 : index
    %c0_14 = arith.constant 0 : index
    %9 = vector.load %arg10[%c0_13, %c0_14] : memref<1x128xf32, #tpu.memory_space<vmem>>, vector<1x128xf32>
    %c0_15 = arith.constant 0 : index
    %c0_16 = arith.constant 0 : index
    %10 = vector.load %arg11[%c0_15, %c0_16] : memref<1x128xf32, #tpu.memory_space<vmem>>, vector<1x128xf32>
    %c8_i32 = arith.constant 8 : i32
    %11 = arith.muli %arg1, %c8_i32 : i32
    %12 = tpu.assume_multiple %11, 8 : i32
    %cst = arith.constant 0.000000e+00 : f32
    %13 = vector.broadcast %cst : f32 to vector<10x1x128xf32>
    %c0_17 = arith.constant 0 : index
    %c0_18 = arith.constant 0 : index
    %c0_19 = arith.constant 0 : index
    %14 = vector.load %arg13[%c0_17, %c0_18, %c0_19] : memref<10x18x128xf32, #tpu.memory_space<vmem>>, vector<10x1x128xf32>
    tpu.vector_store %arg13[%c0_17, %c0_18, %c0_19], %13 {strides = array<i32>} : memref<10x18x128xf32, #tpu.memory_space<vmem>>, vector<10x1x128xf32>,
    %c0_20 = arith.constant 0 : index
    %c17 = arith.constant 17 : index
    %c0_21 = arith.constant 0 : index
    %15 = vector.load %arg13[%c0_20, %c17, %c0_21] : memref<10x18x128xf32, #tpu.memory_space<vmem>>, vector<10x1x128xf32>
    tpu.vector_store %arg13[%c0_20, %c17, %c0_21], %13 {strides = array<i32>} : memref<10x18x128xf32, #tpu.memory_space<vmem>>, vector<10x1x128xf32>,
    %c0_22 = arith.constant 0 : index
    %16 = arith.index_cast %12 : i32 to index
    %c0_23 = arith.constant 0 : index
    %c0_24 = arith.constant 0 : index
    %17 = vector.load %arg2[%c0_22, %16, %c0_23, %c0_24] : memref<1x16x16x128xbf16, #tpu.memory_space<vmem>>, vector<1x8x16x128xbf16>
    %18 = vector.shape_cast %17 : vector<1x8x16x128xbf16> to vector<128x128xbf16>
    %cst_25 = arith.constant dense<0.000000e+00> : vector<128x128xf32>
    %19 = tpu.matmul %18, %0, %cst_25 {dimension_numbers = #tpu.dot_dimension_numbers<[1], [0], [0], [1], [0, 0, 1, 1], [], []>} : vector<128x128xbf16>, vector<128x128xbf16>, vector<128x128xf32> -> vector<128x128xf32>
    %20 = vector.broadcast %1 : vector<1x128xf32> to vector<128x128xf32>
    %21 = arith.mulf %19, %20 : vector<128x128xf32>
    %22 = vector.broadcast %2 : vector<1x128xf32> to vector<128x128xf32>
    %23 = arith.addf %21, %22 : vector<128x128xf32>
    %cst_26 = arith.constant 0.000000e+00 : f32
    %24 = vector.broadcast %cst_26 : f32 to vector<128x128xf32>
    %25 = arith.maximumf %23, %24 : vector<128x128xf32>
    %26 = vector.shape_cast %25 : vector<128x128xf32> to vector<8x16x128xf32>
    %c1 = arith.constant 1 : index
    %c1_27 = arith.constant 1 : index
    %c0_28 = arith.constant 0 : index
    %27 = vector.load %arg13[%c1, %c1_27, %c0_28] : memref<10x18x128xf32, #tpu.memory_space<vmem>>, vector<8x16x128xf32>
    tpu.vector_store %arg13[%c1, %c1_27, %c0_28], %26 {strides = array<i32>} : memref<10x18x128xf32, #tpu.memory_space<vmem>>, vector<8x16x128xf32>,
    %c0_i32 = arith.constant 0 : i32
    %28 = arith.cmpi sgt, %arg1, %c0_i32 : i32
    %29 = arith.extui %28 : i1 to i32
    %c0_i32_29 = arith.constant 0 : i32
    %30 = arith.cmpi ne, %29, %c0_i32_29 : i32
    scf.if %30 {
      %c1_i32_67 = arith.constant 1 : i32
      %121 = arith.subi %12, %c1_i32_67 : i32
      %c0_68 = arith.constant 0 : index
      %122 = arith.index_cast %121 : i32 to index
      %c0_69 = arith.constant 0 : index
      %c0_70 = arith.constant 0 : index
      %123 = vector.load %arg2[%c0_68, %122, %c0_69, %c0_70] : memref<1x16x16x128xbf16, #tpu.memory_space<vmem>>, vector<1x1x16x128xbf16>
      %124 = vector.shape_cast %123 : vector<1x1x16x128xbf16> to vector<16x128xbf16>
      %cst_71 = arith.constant dense<0.000000e+00> : vector<16x128xf32>
      %125 = tpu.matmul %124, %0, %cst_71 {dimension_numbers = #tpu.dot_dimension_numbers<[1], [0], [0], [1], [0, 0, 1, 1], [], []>} : vector<16x128xbf16>, vector<128x128xbf16>, vector<16x128xf32> -> vector<16x128xf32>
      %126 = vector.broadcast %1 : vector<1x128xf32> to vector<16x128xf32>
      %127 = arith.mulf %125, %126 : vector<16x128xf32>
      %128 = vector.broadcast %2 : vector<1x128xf32> to vector<16x128xf32>
      %129 = arith.addf %127, %128 : vector<16x128xf32>
      %cst_72 = arith.constant 0.000000e+00 : f32
      %130 = vector.broadcast %cst_72 : f32 to vector<16x128xf32>
      %131 = arith.maximumf %129, %130 : vector<16x128xf32>
      %132 = vector.shape_cast %131 : vector<16x128xf32> to vector<1x16x128xf32>
      %c0_73 = arith.constant 0 : index
      %c1_74 = arith.constant 1 : index
      %c0_75 = arith.constant 0 : index
      %133 = vector.load %arg13[%c0_73, %c1_74, %c0_75] : memref<10x18x128xf32, #tpu.memory_space<vmem>>, vector<1x16x128xf32>
      tpu.vector_store %arg13[%c0_73, %c1_74, %c0_75], %132 {strides = array<i32>} : memref<10x18x128xf32, #tpu.memory_space<vmem>>, vector<1x16x128xf32>,
    } else {
    }
    %c0_i32_30 = arith.constant 0 : i32
    %31 = arith.cmpi eq, %arg1, %c0_i32_30 : i32
    %32 = arith.extui %31 : i1 to i32
    %c0_i32_31 = arith.constant 0 : i32
    %33 = arith.cmpi ne, %32, %c0_i32_31 : i32
    scf.if %33 {
      %cst_67 = arith.constant 0.000000e+00 : f32
      %121 = vector.broadcast %cst_67 : f32 to vector<1x16x128xf32>
      %c0_68 = arith.constant 0 : index
      %c1_69 = arith.constant 1 : index
      %c0_70 = arith.constant 0 : index
      %122 = vector.load %arg13[%c0_68, %c1_69, %c0_70] : memref<10x18x128xf32, #tpu.memory_space<vmem>>, vector<1x16x128xf32>
      tpu.vector_store %arg13[%c0_68, %c1_69, %c0_70], %121 {strides = array<i32>} : memref<10x18x128xf32, #tpu.memory_space<vmem>>, vector<1x16x128xf32>,
    } else {
    }
    %c1_i32 = arith.constant 1 : i32
    %34 = arith.cmpi slt, %arg1, %c1_i32 : i32
    %35 = arith.extui %34 : i1 to i32
    %c0_i32_32 = arith.constant 0 : i32
    %36 = arith.cmpi ne, %35, %c0_i32_32 : i32
    scf.if %36 {
      %c8_i32_67 = arith.constant 8 : i32
      %121 = arith.addi %12, %c8_i32_67 : i32
      %c0_68 = arith.constant 0 : index
      %122 = arith.index_cast %121 : i32 to index
      %c0_69 = arith.constant 0 : index
      %c0_70 = arith.constant 0 : index
      %123 = vector.load %arg2[%c0_68, %122, %c0_69, %c0_70] : memref<1x16x16x128xbf16, #tpu.memory_space<vmem>>, vector<1x1x16x128xbf16>
      %124 = vector.shape_cast %123 : vector<1x1x16x128xbf16> to vector<16x128xbf16>
      %cst_71 = arith.constant dense<0.000000e+00> : vector<16x128xf32>
      %125 = tpu.matmul %124, %0, %cst_71 {dimension_numbers = #tpu.dot_dimension_numbers<[1], [0], [0], [1], [0, 0, 1, 1], [], []>} : vector<16x128xbf16>, vector<128x128xbf16>, vector<16x128xf32> -> vector<16x128xf32>
      %126 = vector.broadcast %1 : vector<1x128xf32> to vector<16x128xf32>
      %127 = arith.mulf %125, %126 : vector<16x128xf32>
      %128 = vector.broadcast %2 : vector<1x128xf32> to vector<16x128xf32>
      %129 = arith.addf %127, %128 : vector<16x128xf32>
      %cst_72 = arith.constant 0.000000e+00 : f32
      %130 = vector.broadcast %cst_72 : f32 to vector<16x128xf32>
      %131 = arith.maximumf %129, %130 : vector<16x128xf32>
      %132 = vector.shape_cast %131 : vector<16x128xf32> to vector<1x16x128xf32>
      %c9 = arith.constant 9 : index
      %c1_73 = arith.constant 1 : index
      %c0_74 = arith.constant 0 : index
      %133 = vector.load %arg13[%c9, %c1_73, %c0_74] : memref<10x18x128xf32, #tpu.memory_space<vmem>>, vector<1x16x128xf32>
      tpu.vector_store %arg13[%c9, %c1_73, %c0_74], %132 {strides = array<i32>} : memref<10x18x128xf32, #tpu.memory_space<vmem>>, vector<1x16x128xf32>,
    } else {
    }
    %c1_i32_33 = arith.constant 1 : i32
    %37 = arith.cmpi eq, %arg1, %c1_i32_33 : i32
    %38 = arith.extui %37 : i1 to i32
    %c0_i32_34 = arith.constant 0 : i32
    %39 = arith.cmpi ne, %38, %c0_i32_34 : i32
    scf.if %39 {
      %cst_67 = arith.constant 0.000000e+00 : f32
      %121 = vector.broadcast %cst_67 : f32 to vector<1x16x128xf32>
      %c9 = arith.constant 9 : index
      %c1_68 = arith.constant 1 : index
      %c0_69 = arith.constant 0 : index
      %122 = vector.load %arg13[%c9, %c1_68, %c0_69] : memref<10x18x128xf32, #tpu.memory_space<vmem>>, vector<1x16x128xf32>
      tpu.vector_store %arg13[%c9, %c1_68, %c0_69], %121 {strides = array<i32>} : memref<10x18x128xf32, #tpu.memory_space<vmem>>, vector<1x16x128xf32>,
    } else {
    }
    %c0_35 = arith.constant 0 : index
    %c0_36 = arith.constant 0 : index
    %c0_37 = arith.constant 0 : index
    %40 = vector.load %arg13[%c0_35, %c0_36, %c0_37] : memref<10x18x128xf32, #tpu.memory_space<vmem>>, vector<8x16x128xf32>
    %41 = vector.extract_strided_slice %3 {offsets = [0, 0], sizes = [1, 128], strides = [1, 1]} : vector<9x128xf32> to vector<1x128xf32>
    %42 = vector.shape_cast %41 : vector<1x128xf32> to vector<128xf32>
    %43 = vector.shape_cast %42 : vector<128xf32> to vector<1x1x128xf32>
    %44 = vector.broadcast %43 : vector<1x1x128xf32> to vector<8x16x128xf32>
    %45 = arith.mulf %40, %44 : vector<8x16x128xf32>
    %c0_38 = arith.constant 0 : index
    %c1_39 = arith.constant 1 : index
    %c0_40 = arith.constant 0 : index
    %46 = vector.load %arg13[%c0_38, %c1_39, %c0_40] : memref<10x18x128xf32, #tpu.memory_space<vmem>>, vector<8x16x128xf32>
    %47 = vector.extract_strided_slice %3 {offsets = [1, 0], sizes = [1, 128], strides = [1, 1]} : vector<9x128xf32> to vector<1x128xf32>
    %48 = vector.shape_cast %47 : vector<1x128xf32> to vector<128xf32>
    %49 = vector.shape_cast %48 : vector<128xf32> to vector<1x1x128xf32>
    %50 = vector.broadcast %49 : vector<1x1x128xf32> to vector<8x16x128xf32>
    %51 = arith.mulf %46, %50 : vector<8x16x128xf32>
    %52 = arith.addf %45, %51 : vector<8x16x128xf32>
    %c0_41 = arith.constant 0 : index
    %c2 = arith.constant 2 : index
    %c0_42 = arith.constant 0 : index
    %53 = vector.load %arg13[%c0_41, %c2, %c0_42] : memref<10x18x128xf32, #tpu.memory_space<vmem>>, vector<8x16x128xf32>
    %54 = vector.extract_strided_slice %3 {offsets = [2, 0], sizes = [1, 128], strides = [1, 1]} : vector<9x128xf32> to vector<1x128xf32>
    %55 = vector.shape_cast %54 : vector<1x128xf32> to vector<128xf32>
    %56 = vector.shape_cast %55 : vector<128xf32> to vector<1x1x128xf32>
    %57 = vector.broadcast %56 : vector<1x1x128xf32> to vector<8x16x128xf32>
    %58 = arith.mulf %53, %57 : vector<8x16x128xf32>
    %59 = arith.addf %52, %58 : vector<8x16x128xf32>
    %c1_43 = arith.constant 1 : index
    %c0_44 = arith.constant 0 : index
    %c0_45 = arith.constant 0 : index
    %60 = vector.load %arg13[%c1_43, %c0_44, %c0_45] : memref<10x18x128xf32, #tpu.memory_space<vmem>>, vector<8x16x128xf32>
    %61 = vector.extract_strided_slice %3 {offsets = [3, 0], sizes = [1, 128], strides = [1, 1]} : vector<9x128xf32> to vector<1x128xf32>
    %62 = vector.shape_cast %61 : vector<1x128xf32> to vector<128xf32>
    %63 = vector.shape_cast %62 : vector<128xf32> to vector<1x1x128xf32>
    %64 = vector.broadcast %63 : vector<1x1x128xf32> to vector<8x16x128xf32>
    %65 = arith.mulf %60, %64 : vector<8x16x128xf32>
    %66 = arith.addf %59, %65 : vector<8x16x128xf32>
    %c1_46 = arith.constant 1 : index
    %c1_47 = arith.constant 1 : index
    %c0_48 = arith.constant 0 : index
    %67 = vector.load %arg13[%c1_46, %c1_47, %c0_48] : memref<10x18x128xf32, #tpu.memory_space<vmem>>, vector<8x16x128xf32>
    %68 = vector.extract_strided_slice %3 {offsets = [4, 0], sizes = [1, 128], strides = [1, 1]} : vector<9x128xf32> to vector<1x128xf32>
    %69 = vector.shape_cast %68 : vector<1x128xf32> to vector<128xf32>
    %70 = vector.shape_cast %69 : vector<128xf32> to vector<1x1x128xf32>
    %71 = vector.broadcast %70 : vector<1x1x128xf32> to vector<8x16x128xf32>
    %72 = arith.mulf %67, %71 : vector<8x16x128xf32>
    %73 = arith.addf %66, %72 : vector<8x16x128xf32>
    %c1_49 = arith.constant 1 : index
    %c2_50 = arith.constant 2 : index
    %c0_51 = arith.constant 0 : index
    %74 = vector.load %arg13[%c1_49, %c2_50, %c0_51] : memref<10x18x128xf32, #tpu.memory_space<vmem>>, vector<8x16x128xf32>
    %75 = vector.extract_strided_slice %3 {offsets = [5, 0], sizes = [1, 128], strides = [1, 1]} : vector<9x128xf32> to vector<1x128xf32>
    %76 = vector.shape_cast %75 : vector<1x128xf32> to vector<128xf32>
    %77 = vector.shape_cast %76 : vector<128xf32> to vector<1x1x128xf32>
    %78 = vector.broadcast %77 : vector<1x1x128xf32> to vector<8x16x128xf32>
    %79 = arith.mulf %74, %78 : vector<8x16x128xf32>
    %80 = arith.addf %73, %79 : vector<8x16x128xf32>
    %c2_52 = arith.constant 2 : index
    %c0_53 = arith.constant 0 : index
    %c0_54 = arith.constant 0 : index
    %81 = vector.load %arg13[%c2_52, %c0_53, %c0_54] : memref<10x18x128xf32, #tpu.memory_space<vmem>>, vector<8x16x128xf32>
    %82 = vector.extract_strided_slice %3 {offsets = [6, 0], sizes = [1, 128], strides = [1, 1]} : vector<9x128xf32> to vector<1x128xf32>
    %83 = vector.shape_cast %82 : vector<1x128xf32> to vector<128xf32>
    %84 = vector.shape_cast %83 : vector<128xf32> to vector<1x1x128xf32>
    %85 = vector.broadcast %84 : vector<1x1x128xf32> to vector<8x16x128xf32>
    %86 = arith.mulf %81, %85 : vector<8x16x128xf32>
    %87 = arith.addf %80, %86 : vector<8x16x128xf32>
    %c2_55 = arith.constant 2 : index
    %c1_56 = arith.constant 1 : index
    %c0_57 = arith.constant 0 : index
    %88 = vector.load %arg13[%c2_55, %c1_56, %c0_57] : memref<10x18x128xf32, #tpu.memory_space<vmem>>, vector<8x16x128xf32>
    %89 = vector.extract_strided_slice %3 {offsets = [7, 0], sizes = [1, 128], strides = [1, 1]} : vector<9x128xf32> to vector<1x128xf32>
    %90 = vector.shape_cast %89 : vector<1x128xf32> to vector<128xf32>
    %91 = vector.shape_cast %90 : vector<128xf32> to vector<1x1x128xf32>
    %92 = vector.broadcast %91 : vector<1x1x128xf32> to vector<8x16x128xf32>
    %93 = arith.mulf %88, %92 : vector<8x16x128xf32>
    %94 = arith.addf %87, %93 : vector<8x16x128xf32>
    %c2_58 = arith.constant 2 : index
    %c2_59 = arith.constant 2 : index
    %c0_60 = arith.constant 0 : index
    %95 = vector.load %arg13[%c2_58, %c2_59, %c0_60] : memref<10x18x128xf32, #tpu.memory_space<vmem>>, vector<8x16x128xf32>
    %96 = vector.extract_strided_slice %3 {offsets = [8, 0], sizes = [1, 128], strides = [1, 1]} : vector<9x128xf32> to vector<1x128xf32>
    %97 = vector.shape_cast %96 : vector<1x128xf32> to vector<128xf32>
    %98 = vector.shape_cast %97 : vector<128xf32> to vector<1x1x128xf32>
    %99 = vector.broadcast %98 : vector<1x1x128xf32> to vector<8x16x128xf32>
    %100 = arith.mulf %95, %99 : vector<8x16x128xf32>
    %101 = arith.addf %94, %100 : vector<8x16x128xf32>
    %102 = vector.shape_cast %5 : vector<128xf32> to vector<1x1x128xf32>
    %103 = vector.broadcast %102 : vector<1x1x128xf32> to vector<8x16x128xf32>
    %104 = arith.mulf %101, %103 : vector<8x16x128xf32>
    %105 = vector.shape_cast %7 : vector<128xf32> to vector<1x1x128xf32>
    %106 = vector.broadcast %105 : vector<1x1x128xf32> to vector<8x16x128xf32>
    %107 = arith.addf %104, %106 : vector<8x16x128xf32>
    %cst_61 = arith.constant 0.000000e+00 : f32
    %108 = vector.broadcast %cst_61 : f32 to vector<8x16x128xf32>
    %109 = arith.maximumf %107, %108 : vector<8x16x128xf32>
    %110 = vector.shape_cast %109 : vector<8x16x128xf32> to vector<128x128xf32>
    %111 = arith.truncf %110 : vector<128x128xf32> to vector<128x128xbf16>
    %cst_62 = arith.constant dense<0.000000e+00> : vector<128x128xf32>
    %112 = tpu.matmul %111, %8, %cst_62 {dimension_numbers = #tpu.dot_dimension_numbers<[1], [0], [0], [1], [0, 0, 1, 1], [], []>} : vector<128x128xbf16>, vector<128x128xbf16>, vector<128x128xf32> -> vector<128x128xf32>
    %113 = vector.broadcast %9 : vector<1x128xf32> to vector<128x128xf32>
    %114 = arith.mulf %112, %113 : vector<128x128xf32>
    %115 = vector.broadcast %10 : vector<1x128xf32> to vector<128x128xf32>
    %116 = arith.addf %114, %115 : vector<128x128xf32>
    %117 = arith.extf %18 : vector<128x128xbf16> to vector<128x128xf32>
    %118 = arith.addf %116, %117 : vector<128x128xf32>
    %119 = vector.shape_cast %118 : vector<128x128xf32> to vector<1x8x16x128xf32>
    %c0_63 = arith.constant 0 : index
    %c0_64 = arith.constant 0 : index
    %c0_65 = arith.constant 0 : index
    %c0_66 = arith.constant 0 : index
    %120 = vector.load %arg12[%c0_63, %c0_64, %c0_65, %c0_66] : memref<1x8x16x128xf32, #tpu.memory_space<vmem>>, vector<1x8x16x128xf32>
    tpu.vector_store %arg12[%c0_63, %c0_64, %c0_65, %c0_66], %119 {strides = array<i32>} : memref<1x8x16x128xf32, #tpu.memory_space<vmem>>, vector<1x8x16x128xf32>,
    return
  }
  func.func @transform_0(%arg0: i32, %arg1: i32) -> (i32, i32, i32, i32) {
    %c0_i32 = arith.constant 0 : i32
    %c0_i32_0 = arith.constant 0 : i32
    %c0_i32_1 = arith.constant 0 : i32
    %c0_i32_2 = arith.constant 0 : i32
    return %arg0, %c0_i32, %c0_i32_0, %c0_i32_1 : i32, i32, i32, i32
  }
  func.func @transform_1(%arg0: i32, %arg1: i32) -> (i32, i32) {
    %c0_i32 = arith.constant 0 : i32
    %c0_i32_0 = arith.constant 0 : i32
    %c0_i32_1 = arith.constant 0 : i32
    return %c0_i32, %c0_i32_0 : i32, i32
  }
  func.func @transform_2(%arg0: i32, %arg1: i32) -> (i32, i32) {
    %c0_i32 = arith.constant 0 : i32
    %c0_i32_0 = arith.constant 0 : i32
    %c0_i32_1 = arith.constant 0 : i32
    return %c0_i32, %c0_i32_0 : i32, i32
  }
  func.func @transform_3(%arg0: i32, %arg1: i32) -> (i32, i32) {
    %c0_i32 = arith.constant 0 : i32
    %c0_i32_0 = arith.constant 0 : i32
    %c0_i32_1 = arith.constant 0 : i32
    return %c0_i32, %c0_i32_0 : i32, i32
  }
  func.func @transform_4(%arg0: i32, %arg1: i32) -> (i32, i32) {
    %c0_i32 = arith.constant 0 : i32
    %c0_i32_0 = arith.constant 0 : i32
    %c0_i32_1 = arith.constant 0 : i32
    return %c0_i32, %c0_i32_0 : i32, i32
  }
  func.func @transform_5(%arg0: i32, %arg1: i32) -> (i32, i32) {
    %c0_i32 = arith.constant 0 : i32
    %c0_i32_0 = arith.constant 0 : i32
    %c0_i32_1 = arith.constant 0 : i32
    return %c0_i32, %c0_i32_0 : i32, i32
  }
  func.func @transform_6(%arg0: i32, %arg1: i32) -> (i32, i32) {
    %c0_i32 = arith.constant 0 : i32
    %c0_i32_0 = arith.constant 0 : i32
    %c0_i32_1 = arith.constant 0 : i32
    return %c0_i32, %c0_i32_0 : i32, i32
  }
  func.func @transform_7(%arg0: i32, %arg1: i32) -> (i32, i32) {
    %c0_i32 = arith.constant 0 : i32
    %c0_i32_0 = arith.constant 0 : i32
    %c0_i32_1 = arith.constant 0 : i32
    return %c0_i32, %c0_i32_0 : i32, i32
  }
  func.func @transform_8(%arg0: i32, %arg1: i32) -> (i32, i32) {
    %c0_i32 = arith.constant 0 : i32
    %c0_i32_0 = arith.constant 0 : i32
    %c0_i32_1 = arith.constant 0 : i32
    return %c0_i32, %c0_i32_0 : i32, i32
  }
  func.func @transform_9(%arg0: i32, %arg1: i32) -> (i32, i32) {
    %c0_i32 = arith.constant 0 : i32
    %c0_i32_0 = arith.constant 0 : i32
    %c0_i32_1 = arith.constant 0 : i32
    return %c0_i32, %c0_i32_0 : i32, i32
  }
  func.func @transform_10(%arg0: i32, %arg1: i32) -> (i32, i32, i32, i32) {
    %c0_i32 = arith.constant 0 : i32
    %c0_i32_0 = arith.constant 0 : i32
    %c0_i32_1 = arith.constant 0 : i32
    return %arg0, %arg1, %c0_i32, %c0_i32_0 : i32, i32, i32, i32
  }
}

</mosaic_0001>

<bundles_post_ra>
// kernel: tpu_custom_call.1
= control target key start
LH: loop header
LB: loop body
LE: loop exit
PB: predicated region body
PF: predicated region fallthrough
CT: control target
= control target key end

     0   :  { %s3696_s0 = inlined_call_operand.hbm [shape: bf16[2,16,16,128], index: 0, kind: input, shape index: {}]   ;;  %s3697_s1 = inlined_call_operand.hbm [shape: bf16[128,128], index: 1, kind: input, shape index: {}]   ;;  %s3698_s2 = inlined_call_operand.vmem [shape: f32[1,128], index: 2, kind: input, shape index: {}]   ;;  %s3699_s3 = inlined_call_operand.vmem [shape: f32[1,128], index: 3, kind: input, shape index: {}]   ;;  %s3700_s4 = inlined_call_operand.hbm [shape: f32[9,128], index: 4, kind: input, shape index: {}]   ;;  %s3701_s5 = inlined_call_operand.vmem [shape: f32[1,128], index: 5, kind: input, shape index: {}]   ;;  %s3702_s6 = inlined_call_operand.vmem [shape: f32[1,128], index: 6, kind: input, shape index: {}]   ;;  %s3703_s7 = inlined_call_operand.hbm [shape: bf16[128,128], index: 7, kind: input, shape index: {}]   ;;  %s3704_s8 = inlined_call_operand.vmem [shape: f32[1,128], index: 8, kind: input, shape index: {}]   ;;  %s3705_s9 = inlined_call_operand.vmem [shape: f32[1,128], index: 9, kind: input, shape index: {}]   ;;  %s3706_s10 = inlined_call_operand.hbm [shape: f32[2,16,16,128], index: 10, kind: output, shape index: {}]  }
   0x1   :  { %3749 = sst [smem:[#allocation39_spill]] %s3697_s1 }
   0x2   :  { %3750 = sst [smem:[#allocation40_spill]] %s3698_s2 }
   0x3   :  { %3751 = sst [smem:[#allocation41_spill]] %s3699_s3 }
   0x4   :  { %3752 = sst [smem:[#allocation42_spill]] %s3700_s4 }
   0x5   :  { %3753 = sst [smem:[#allocation43_spill]] %s3702_s6 }
   0x6   :  { %3754 = sst [smem:[#allocation44_spill]] %s3703_s7 }
   0x7   :  { %3755 = sst [smem:[#allocation45_spill]] %s3704_s8 }
   0x8   :  { %3756 = sst [smem:[#allocation46_spill]] %s3705_s9 }
   0x9   :  { %3757 = sst [smem:[#allocation47_spill]] %s3706_s10 }
   0xa   :  { %15 = vsyncpa [#allocation4], 0 }
   0xb   :  { %17 = vsyncpa [#allocation4 + $0x1], 0 }
   0xc   :  { %18 = vsyncpa [#allocation7], 0 }
   0xd   :  { %19 = vsyncpa [#allocation10], 0 }
   0xe   :  { %20 = vsyncpa [#allocation5], 0 }
   0xf   :  { %22 = vsyncpa [#allocation5 + $0x1], 0  ;;  %s2584_s13 = smov 0   ;;  %s2586_s14 = smov 0  }
  0x10   :  { %s2588_s15 = smov 0   ;;  %s2590_s16 = smov 0  }
  0x11   :  { %s2592_s17 = smov 0   ;;  %s2594_s18 = smov 0  }
  0x12   :  { %s2596_s19 = smov 0   ;;  %s2598_s20 = smov 0  }
  0x13   :  { %s2600_s21 = smov 0   ;;  %s2602_s22 = smov 0  }
  0x14   :  { %s2604_s23 = smov 0  }
  0x15 LB: > { %3758 = sst [smem:[#allocation16_spill]] %s2469_s13  ;;  %s1831_s24 = sadd.s32 4294967295, %s2509_s23   ;;  %s2509_s23 = sphi %s2604_s23, %s28_s23   ;;  %s2505_s22 = sphi %s2602_s22, %s3840_s22   ;;  %s2501_s21 = sphi %s2600_s21, %s3839_s21   ;;  %s2497_s20 = sphi %s2598_s20, %s3838_s20   ;;  %s2493_s19 = sphi %s2596_s19, %s3837_s19   ;;  %s2489_s18 = sphi %s2594_s18, %s3836_s18   ;;  %s2485_s17 = sphi %s2592_s17, %s3835_s17   ;;  %s2481_s16 = sphi %s2590_s16, %s3834_s16   ;;  %s2477_s15 = sphi %s2588_s15, %s3833_s15   ;;  %s2473_s14 = sphi %s2586_s14, %s3832_s14   ;;  %s2469_s13 = sphi %s2584_s13, %s3831_s13  }
  0x16   : > { %3759 = sst [smem:[#allocation17_spill]] %s2497_s20  ;;  %s1832_s25 = sadd.s32 4294967294, %s2509_s23  }
  0x17   : > { %p60_p0 = scmp.ne.s32.totalorder %s2485_s17, %s2481_s16  ;;  %p2640_p1 = scmp.eq.s32.totalorder %s1831_s24, 0 }
  0x18   : > { %p274_p2 = scmp.ne.s32.totalorder %s2477_s15, %s2473_s14  ;;  %p275_p4 = scmp.eq.s32.totalorder %s1831_s24, 3 }
  0x19   : > { %s3760_s26 = scalar_select %p2640_p1, 1, 0 }
  0x1a   : > { %p2649_p3 = por %p2640_p1, %p60_p0  ;;  %p280_p5 = scmp.ne.s32.totalorder %s2473_s14, %s2469_s13 }
  0x1b   : > { %p281_p6 = scmp.eq.s32.totalorder %s1832_s25, 3  ;;  %p2655_p7 = por %p275_p4, %p274_p2 }
  0x1c   : > { %s3761_s28 = scalar_select %p2649_p3, 1, 0 }
  0x1d   : > { %s3762_s29 = scalar_select %p2655_p7, 1, 0 }
  0x1e   : > { %p1833_p8 = scmp.ge.s32.totalorder %s2509_s23, 1  ;;  %p2660_p9 = por %p281_p6, %p280_p5 }
  0x1f   : > { %3763 = sst [smem:[#allocation18_spill]] %s3762_s29  ;;  %p288_p10 = scmp.lt.s32.totalorder %s2509_s23, 5 }
  0x20   : > { %s3764_s30 = scalar_select %p2660_p9, 1, 0 }
  0x21   : > { %p2665_p11 = pnand %p1833_p8, %p288_p10  ;;  %s2511_s12 = smov [#allocation6]  }
  0x22   : > { %3765 = sst [smem:[#allocation19_spill]] %s3764_s30  ;;  %s300_s16 = sshll.u32 %s2511_s12, 4  ;;  %s301_s16 = int_to_ptr.vmem [resolvable:$true] %s300_s16 }
  0x23   : > { %s3766_s11 = scalar_select %p2665_p11, 1, 0 }
  0x24   : > { %p2109_p12 = pneg %p2665_p11  ;;  %s2512_s25 = smov [#allocation8]  }
  0x25   : > { %s319_s27 = sshll.u32 %s2512_s25, 4  ;;  %s3768_s1 = sld [smem:[#allocation39_spill]]  ;;  %s2677_s27 = int_to_ptr.vmem [resolvable:$true] %s319_s27 }
  0x26   : > { %p2673_p13 = pnand %p2109_p12, %p2640_p1 }
  0x28   : > { %p2687_p2 = pneg %p2673_p13 }
  0x2b   : > { %s2265_s10 = scalar_lea.hbm %s3768_s1, 1024 }
  0x2c   : > { %p2266_p0 = scmp.ne.s32.totalorder %s3768_s1, %s2265_s10  ;;  %p2272_p6 = scmp.lt.u32.totalorder %s2265_s10, %s3768_s1 }
  0x2e   : > { %p2268_p4 = pnand %p2687_p2, %p2266_p0 }
  0x30   : > { %p2269_p5 = pneg %p2268_p4 }
  0x32   : > { %p2274_p8 = pnand %p2272_p6, %p2269_p5 }
  0x34   : > { %2277 = shalt.err (!%p2274_p8)
}
  0x35   : > { %s2278_s13 = scalar_lea.vmem %s301_s16, 1024  ;;  %p2286_p7 = scmp.lt.s32.totalorder %s301_s16, %s301_s16 }
  0x36   : > { %p2279_p10 = scmp.ne.s32.totalorder %s301_s16, %s2278_s13  ;;  %p2287_p1 = scmp.lt.s32.totalorder %s2278_s13, %s2278_s13 }
  0x38   : > { %p2281_p12 = pnand %p2279_p10, %p2687_p2  ;;  %p2288_p3 = por %p2287_p1, %p2286_p7 }
  0x3a   : > { %p2282_p9 = pneg %p2281_p12 }
  0x3c   : > { %p2289_p11 = pnand %p2288_p3, %p2282_p9 }
  0x3e   : > { %2292 = shalt.err (!%p2289_p11)
}
  0x3f   : > { %s3717_s20 = smov 64   ;;  %s3719_s29 = smov 4  }
  0x40   : > { %2112 = dma.hbm_to_vmem [thread:$0]  (!%p2673_p13), %s3768_s1, 1024, %s301_s16, [#allocation7], %s3717_s20, %s3717_s20, %s3719_s29  }
  0x41   : > { %s3770_s4 = sld [smem:[#allocation42_spill]] }
  0x47   : > { %s2293_s2 = scalar_lea.hbm %s3770_s4, 256 }
  0x48   : > { %p2294_p1 = scmp.ne.s32.totalorder %s3770_s4, %s2293_s2  ;;  %p2300_p9 = scmp.lt.u32.totalorder %s2293_s2, %s3770_s4 }
  0x4a   : > { %p2296_p3 = pnand %p2294_p1, %p2687_p2 }
  0x4c   : > { %p2297_p7 = pneg %p2296_p3 }
  0x4e   : > { %p2302_p11 = pnand %p2300_p9, %p2297_p7 }
  0x50   : > { %2305 = shalt.err (!%p2302_p11)
}
  0x51   : > { %s2306_s16 = scalar_lea.vmem %s2677_s27, 256  ;;  %p2314_p6 = scmp.lt.s32.totalorder %s2677_s27, %s2677_s27 }
  0x52   : > { %p2307_p0 = scmp.ne.s32.totalorder %s2677_s27, %s2306_s16  ;;  %p2315_p8 = scmp.lt.s32.totalorder %s2306_s16, %s2306_s16 }
  0x54   : > { %p2309_p4 = pnand %p2307_p0, %p2687_p2  ;;  %p2316_p10 = por %p2315_p8, %p2314_p6 }
  0x56   : > { %p2310_p5 = pneg %p2309_p4 }
  0x58   : > { %p2317_p12 = pnand %p2316_p10, %p2310_p5 }
  0x5a   : > { %2320 = shalt.err (!%p2317_p12)
}
  0x5b   : > { %s2515_s9 = smov 128   ;;  %s2516_s2 = smov 8  }
  0x5c   : > { %2115 = dma.hbm_to_vmem [thread:$0]  (!%p2673_p13), %s3770_s4, 256, %s2677_s27, [#allocation7], %s2515_s9, %s2515_s9, %s2516_s2  }
  0x5d   : > { %s2517_s3 = smov [#allocation9]   ;;  %s3771_s7 = sld [smem:[#allocation44_spill]] }
  0x5e   : > { %s338_s10 = sshll.u32 %s2517_s3, 4  ;;  %s339_s10 = int_to_ptr.vmem [resolvable:$true] %s338_s10 }
  0x63   : > { %s2321_s13 = scalar_lea.hbm %s3771_s7, 1024 }
  0x64   : > { %p2322_p1 = scmp.ne.s32.totalorder %s3771_s7, %s2321_s13  ;;  %p2328_p9 = scmp.lt.u32.totalorder %s2321_s13, %s3771_s7 }
  0x66   : > { %p2324_p3 = pnand %p2322_p1, %p2687_p2 }
  0x68   : > { %p2325_p7 = pneg %p2324_p3 }
  0x6a   : > { %p2330_p11 = pnand %p2328_p9, %p2325_p7 }
  0x6c   : > { %2333 = shalt.err (!%p2330_p11)
}
  0x6d   : > { %s2334_s27 = scalar_lea.vmem %s339_s10, 1024  ;;  %p2342_p6 = scmp.lt.s32.totalorder %s339_s10, %s339_s10 }
  0x6e   : > { %p2335_p0 = scmp.ne.s32.totalorder %s339_s10, %s2334_s27  ;;  %p2343_p8 = scmp.lt.s32.totalorder %s2334_s27, %s2334_s27 }
  0x70   : > { %p2337_p4 = pnand %p2335_p0, %p2687_p2  ;;  %p2344_p10 = por %p2343_p8, %p2342_p6 }
  0x72   : > { %p2338_p5 = pneg %p2337_p4 }
  0x74   : > { %p2345_p12 = pnand %p2344_p10, %p2338_p5 }
  0x76   : > { %2348 = shalt.err (!%p2345_p12)
}
  0x77   : > { %s3772_s20 = smov 4   ;;  %s3773_s9 = smov 64  }
  0x78   : > { %2118 = dma.hbm_to_vmem [thread:$0]  (!%p2673_p13), %s3771_s7, 1024, %s339_s10, [#allocation10], %s3773_s9, %s3773_s9, %s3772_s20  }
  0x79   : > { %s37_s12 = sadd.s32 1, %s2501_s21  ;;  %s40_s24 = sadd.s32 1, %s2505_s22 }
  0x7a   : > { %p38_p2 = scmp.ge.s32.totalorder %s37_s12, 2  ;;  %s47_s2 = sadd.s32 1, %s2489_s18 }
  0x7b   : > { %p54_p1 = scmp.ne.s32.totalorder %s2489_s18, %s2485_s17  ;;  %p55_p3 = scmp.eq.s32.totalorder %s2509_s23, 0 }
  0x7c   : > { %s3842_s12 = smov (%p38_p2, %s37_s12), 0  ;;  %s3844_s24 = smov (!%p38_p2, %s40_s24), %s2505_s22 }
  0x7d   : > { %3774 = sst [smem:[#allocation20_spill]] %s3842_s12  ;;  %s260_s6 = ssub.s32 %s2501_s21, %s3842_s12 }
  0x7e   : > { %p42_p7 = scmp.ge.s32.totalorder %s3844_s24, 2  ;;  %p2130_p9 = scmp.lt.s32.totalorder %s2509_s23, 4 }
  0x7f   : > { %p2762_p13 = por %p55_p3, %p54_p1  ;;  %s358_s3 = sand.u32 1, %s2489_s18  }
  0x80   : > { %s3846_s24 = smov (%p42_p7, %s3844_s24), 0  ;;  %s1838_s10 = sshll.u32 %s358_s3, 7 }
  0x81   : > { %3776 = sst [smem:[#allocation21_spill]] %s3846_s24  ;;  %s44_s30 = ssub.s32 %s2505_s22, %s3846_s24 }
  0x82   : > { %p45_p11 = scmp.eq.s32.totalorder %s44_s30, 0  ;;  %s261_s25 = sor.u32 %s260_s6, %s44_s30 }
  0x83   : > { %p262_p0 = scmp.eq.s32.totalorder %s261_s25, 0  ;;  %s1901_s13 = sshll.u32 %s2505_s22, 11 }
  0x84   : > { %s2773_s16 = scalar_select %p45_p11, %s2489_s18, %s47_s2  }
  0x85   : > { %s3777_s27 = sadd.s32 1, %s2477_s15  ;;  %s2783_s7 = scalar_lea.hbm %s3696_s0, %s1901_s13 }
  0x86   : > { %s2778_s1 = scalar_select %p262_p0, %s2477_s15, %s3777_s27  }
  0x87   : > { %s362_s12 = scalar_lea.vmem [#allocation3], %s1838_s10  ;;  %p2791_p4 = pnand %p2130_p9, %p2762_p13 }
  0x88   : > { %s369_s24 = sshll.u32 %s362_s12, 4  ;;  %s2795_s6 = scalar_lea.sflag [#allocation4], %s358_s3  ;;  %s2785_s24 = int_to_ptr.vmem [resolvable:$true] %s369_s24 }
  0x89   : > { %s2349_s4 = scalar_lea.hbm %s2783_s7, 2048  ;;  %p2351_p6 = pneg %p2791_p4 }
  0x8a   : > { %p2350_p5 = scmp.ne.s32.totalorder %s2783_s7, %s2349_s4  ;;  %s2354_s8 = scalar_lea.hbm %s3696_s0, 4096 }
  0x8b   : > { %p2355_p12 = scmp.lt.u32.totalorder %s2783_s7, %s3696_s0  ;;  %p2356_p2 = scmp.lt.u32.totalorder %s2354_s8, %s2349_s4 }
  0x8c   : > { %p2352_p8 = pnand %p2351_p6, %p2350_p5  ;;  %p2358_p3 = scmp.lt.u32.totalorder %s2349_s4, %s2783_s7 }
  0x8d   : > { %p2357_p1 = por %p2356_p2, %p2355_p12 }
  0x8e   : > { %p2353_p10 = pneg %p2352_p8 }
  0x8f   : > { %p2359_p7 = por %p2358_p3, %p2357_p1 }
  0x91   : > { %p2360_p9 = pnand %p2359_p7, %p2353_p10 }
  0x93   : > { %2363 = shalt.err (!%p2360_p9)
}
  0x94   : > { %s2364_s3 = scalar_lea.vmem %s2785_s24, 2048  ;;  %s2518_s13 = smov [#allocation3]  }
  0x95   : > { %p2365_p13 = scmp.ne.s32.totalorder %s2785_s24, %s2364_s3  ;;  %s2369_s27 = sshll.u32 %s2518_s13, 4  ;;  %s2370_s27 = int_to_ptr.vmem [resolvable:$false] %s2369_s27 }
  0x96   : > { %s2371_s29 = scalar_lea.vmem %s2370_s27, 4096  ;;  %p2372_p5 = scmp.lt.s32.totalorder %s2785_s24, %s2370_s27 }
  0x97   : > { %p2367_p11 = pnand %p2365_p13, %p2351_p6  ;;  %p2373_p8 = scmp.lt.s32.totalorder %s2371_s29, %s2364_s3 }
  0x99   : > { %p2368_p0 = pneg %p2367_p11  ;;  %p2374_p12 = por %p2373_p8, %p2372_p5 }
  0x9b   : > { %p2375_p2 = pnand %p2374_p12, %p2368_p0 }
  0x9d   : > { %2378 = shalt.err (!%p2375_p2)
}
  0x9e   : > { %2122 = dma.hbm_to_vmem [thread:$0]  (!%p2791_p4), %s2783_s7, 2048, %s2785_s24, %s2795_s6, %s3773_s9, %s3773_s9, %s3772_s20  }
  0x9f   : > { %p3779_p6 = scmp.ne.s32.totalorder %s3766_s11, 0 }
  0xa1   : > { %381 = sbr.rel (%p3779_p6) target bundleno = 1318 (0x526), region = 60 }
  0xa8   : > { %s383_s4 = sand.u32 1, %s2485_s17   ;;  %p3780_p10 = scmp.ne.s32.totalorder %s3761_s28, 0 }
  0xa9   : > { %s2829_s12 = sshll.u32 %s383_s4, 7  ;;  %s384_s10 = scalar_lea.sflag [#allocation4], %s383_s4 }
  0xaa   : > { %s387_s8 = scalar_lea.vmem [#allocation3], %s2829_s12 }
  0xab   : > { %2452 = dma.done.wait (%p3780_p10), %s384_s10, 2048  }
  0xac   : > { %2454 = vsyncadd (%p3780_p10), %s384_s10, 4294965248  ;;  %p3781_p1 = scmp.ne.s32.totalorder %s3760_s26, 0 }
  0xae   : > { %2456 = dma.done.wait (%p3781_p1), [#allocation7], 1280  }
  0xaf   : > { %2458 = vsyncadd (%p3781_p1), [#allocation7], 4294966016 }
  0xb0   : > { %2460 = dma.done.wait (%p3781_p1), [#allocation10], 1024  }
  0xb1   : > { %2462 = vsyncadd (%p3781_p1), [#allocation10], 4294966272  ;;  %s433_s7 = sand.u32 1, %s2473_s14   ;;  %s1847_s11 = sshll.u32 %s2493_s19, 3  ;;  %v2519_v0 = vmov 0.0   ;;  %v2850_v1 = vld [vmem:[#allocation8] sm:$0xff] }
  0xb2   : > { %479 = vst [vmem:[#allocation2] sm:$0x1] %v2519_v0  ;;  %480 = vst [vmem:[#allocation2 + $0x18] sm:$0x1] %v2519_v0  ;;  %s2848_s26 = sshll.u32 %s433_s7, 7  ;;  %s3782_s2 = sld [smem:[#allocation43_spill]] }
  0xb3   : > { %481 = vst [vmem:[#allocation2 + $0x30] sm:$0x1] %v2519_v0  ;;  %482 = vst [vmem:[#allocation2 + $0x48] sm:$0x1] %v2519_v0  ;;  %v2852_v2 = vld [vmem:[#allocation8 + $0x8] ss:$0 sm:$0xff] }
  0xb4   : > { %483 = vst [vmem:[#allocation2 + $0x60] sm:$0x1] %v2519_v0  ;;  %484 = vst [vmem:[#allocation2 + $0x78] sm:$0x1] %v2519_v0  ;;  %v2857_v3 = vld [vmem:[%s3701_s5] ss:$0 sm:$0xff] }
  0xb5   : > { %485 = vst [vmem:[#allocation2 + $0x90] sm:$0x1] %v2519_v0  ;;  %486 = vst [vmem:[#allocation2 + $0xa8] sm:$0x1] %v2519_v0  ;;  %v2864_v5 = vld [vmem:[#allocation9] sm:$0xf] }
  0xb6   : > { %487 = vst [vmem:[#allocation2 + $0xc0] sm:$0x1] %v2519_v0  ;;  %488 = vst [vmem:[#allocation2 + $0xd8] sm:$0x1] %v2519_v0  ;;  %v2866_v6 = vld [vmem:[#allocation9 + $0x4] sm:$0xf] }
  0xb7   : > { %489 = vst [vmem:[#allocation2 + $0x11] sm:$0x1] %v2519_v0  ;;  %490 = vst [vmem:[#allocation2 + $0x29] sm:$0x1] %v2519_v0  ;;  %v2868_v7 = vld [vmem:[#allocation9 + $0x8] sm:$0xf] }
  0xb8   : > { %491 = vst [vmem:[#allocation2 + $0x41] sm:$0x1] %v2519_v0  ;;  %492 = vst [vmem:[#allocation2 + $0x59] sm:$0x1] %v2519_v0  ;;  %v2862_v4 = vld [vmem:[%s3782_s2] ss:$0 sm:$0xff] }
  0xb9   : > { %493 = vst [vmem:[#allocation2 + $0x71] sm:$0x1] %v2519_v0  ;;  %494 = vst [vmem:[#allocation2 + $0x89] sm:$0x1] %v2519_v0  ;;  %v2870_v8 = vld [vmem:[#allocation9 + $0xc] sm:$0xf] }
  0xba   : > { %495 = vst [vmem:[#allocation2 + $0xa1] sm:$0x1] %v2519_v0  ;;  %496 = vst [vmem:[#allocation2 + $0xb9] sm:$0x1] %v2519_v0  ;;  %v2872_v9 = vld [vmem:[#allocation9 + $0x10] sm:$0xf] }
  0xbb   : > { %497 = vst [vmem:[#allocation2 + $0xd1] sm:$0x1] %v2519_v0  ;;  %498 = vst [vmem:[#allocation2 + $0xe9] sm:$0x1] %v2519_v0  ;;  %v2874_v10 = vld [vmem:[#allocation9 + $0x14] sm:$0xf] }
  0xbc   : > { %v2876_v11 = vld [vmem:[#allocation9 + $0x18] sm:$0xf]  ;;  %v2878_v12 = vld [vmem:[#allocation9 + $0x1c] sm:$0xf]  ;;  %v2880_v13 = vld [vmem:[#allocation9 + $0x20] sm:$0xf] }
  0xbd   : > { %v2882_v14 = vld [vmem:[#allocation9 + $0x24] sm:$0xf]  ;;  %v2884_v15 = vld [vmem:[#allocation9 + $0x28] sm:$0xf]  ;;  %v2886_v16 = vld [vmem:[#allocation9 + $0x2c] sm:$0xf] }
  0xbe   : > { %v2888_v17 = vld [vmem:[#allocation9 + $0x30] sm:$0xf]  ;;  %v2890_v18 = vld [vmem:[#allocation9 + $0x34] sm:$0xf]  ;;  %v2892_v19 = vld [vmem:[#allocation9 + $0x38] sm:$0xf] }
  0xbf   : > { %v2894_v20 = vld [vmem:[#allocation9 + $0x3c] sm:$0xf]  ;;  %s3783_s25 = sld [smem:[#allocation45_spill]]  ;;  %s3785_s27 = sld [smem:[#allocation46_spill]]  ;;  %v2906_v23 = vld [vmem:[#allocation6] sm:$0xff]   ;;  %v2917_v25 = vld [vmem:[#allocation6 + $0x10] sm:$0xff]  }
  0xc0   : > { %v2908_v24 = vld [vmem:[#allocation6 + $0x8] sm:$0xff]   ;;  %s1903_s29 = sshll.u32 %s2493_s19, 6  ;;  %1957 = vmatprep.subr.bf16.mxu0 %v2906_v23  ;;  %2061 = vmatprep.subr.bf16.mxu1 %v2906_v23  ;;  %v2933_v28 = vld [vmem:[#allocation6 + $0x18] sm:$0xff]   ;;  %v2941_v29 = vld [vmem:[#allocation6 + $0x20] sm:$0xff]   ;;  %s3795_s20 = sld [smem:[#allocation40_spill]] }
  0xc1   : > { %1958 = vmatpush3.bf16.msra.mxu0 %v2906_v23  ;;  %2069 = vmatpush3.bf16.msra.mxu1 %v2906_v23  ;;  %s2921_s4 = scalar_lea.vmem %s387_s8, %s1903_s29 [#allocation3]  ;;  %v2947_v30 = vld [vmem:[#allocation6 + $0x28] sm:$0xff]   ;;  %v2953_v31 = vld [vmem:[#allocation6 + $0x30] sm:$0xff]   ;;  %v2959_v32 = vld [vmem:[#allocation6 + $0x38] sm:$0xff]   ;;  %s3796_s2 = sld [smem:[#allocation41_spill]] }
  0xc2   : > { %1959 = vmatprep.subr.bf16.mxu0 %v2908_v24  ;;  %2062 = vmatprep.subr.bf16.mxu1 %v2908_v24  ;;  %v2926_v26 = vld [vmem:[%s2921_s4] sm:$0xff]   ;;  %v2964_v33 = vld [vmem:[%s2921_s4 + $0x8] sm:$0xff]   ;;  %v2972_v35 = vld [vmem:[%s2921_s4 + $0x10] sm:$0xff]   ;;  %s3034_s6 = scalar_lea.vmem [#allocation11], %s2848_s26  ;;  %p1868_p4 = scmp.le.s32.totalorder %s2493_s19, 0 }
  0xc3   : > { %3787 = vst [vmem:[#allocation24_spill] sm:$0xff] %v2926_v26  ;;  %v2929_v27 = vld [vmem:[%s2921_s4 + $0x20] sm:$0xff]   ;;  %1973 = vmatprep.mubr.bf16.mxu0 %v2926_v26  ;;  %3789 = vst [vmem:[#allocation26_spill] sm:$0xff] %v2964_v33  ;;  %v2967_v34 = vld [vmem:[%s2921_s4 + $0x28] sm:$0xff]   ;;  %s1869_s30 = sadd.s32 (!%p1868_p4), 4294967295, %s1847_s11  ;;  %vm2521_vm0 = vmmov (!%p1868_p4), 0  }
  0xc4   : > { %3788 = vst [vmem:[#allocation25_spill] sm:$0xff] %v2929_v27  ;;  %1981 = vmatprep.mubr.bf16.mxu1 %v2929_v27  ;;  %3790 = vst [vmem:[#allocation27_spill] sm:$0xff] %v2967_v34  ;;  %v2975_v36 = vld [vmem:[%s2921_s4 + $0x30] sm:$0xff]   ;;  %v2984_v37 = vld [vmem:[%s2921_s4 + $0x18] sm:$0xff]  }
  0xc5   : > { %v2899_v21 = vld [vmem:[%s3783_s25] ss:$0 sm:$0xff]  ;;  %1960 = vmatpush3.bf16.msra.mxu0 %v2908_v24  ;;  %2070 = vmatpush3.bf16.msra.mxu1 %v2908_v24  ;;  %3791 = vst [vmem:[#allocation28_spill] sm:$0xff] %v2972_v35  ;;  %3792 = vst [vmem:[#allocation29_spill] sm:$0xff] %v2975_v36  ;;  %v2987_v38 = vld [vmem:[%s2921_s4 + $0x38] sm:$0xff]   ;;  %s1904_s25 = sshll.u32 (!%p1868_p4), %s1869_s30, 3 }
  0xc6   : > { %3784 = vst [vmem:[#allocation22_spill] sm:$0xff] %v2899_v21  ;;  %v2904_v22 = vld [vmem:[%s3785_s27] ss:$0 sm:$0xff]  ;;  %1961 = vmatprep.subr.bf16.mxu0 %v2917_v25  ;;  %2063 = vmatprep.subr.bf16.mxu1 %v2917_v25  ;;  %3793 = vst [vmem:[#allocation30_spill] sm:$0xff] %v2984_v37  ;;  %s795_s3 = scalar_lea.vmem (!%p1868_p4), %s387_s8, %s1904_s25 [#allocation3] }
  0xc7   : > { %3786 = vst [vmem:[#allocation23_spill] sm:$0xff] %v2904_v22  ;;  %3794 = vst [vmem:[#allocation31_spill] sm:$0xff] %v2987_v38  ;;  %v2994_v39 = vld [vmem:[%s3795_s20] ss:$0 sm:$0xff] }
  0xc8   : > { %v2999_v40 = vld [vmem:[%s3796_s2] ss:$0 sm:$0xff] }
  0xc9   : > { %1962 = vmatpush3.bf16.msra.mxu0 %v2917_v25  ;;  %2071 = vmatpush3.bf16.msra.mxu1 %v2917_v25 }
  0xca   : > { %1963 = vmatprep.subr.bf16.mxu0 %v2933_v28  ;;  %2064 = vmatprep.subr.bf16.mxu1 %v2933_v28 }
  0xcd   : > { %1964 = vmatpush3.bf16.msra.mxu0 %v2933_v28  ;;  %2072 = vmatpush3.bf16.msra.mxu1 %v2933_v28 }
  0xce   : > { %1965 = vmatprep.subr.bf16.mxu0 %v2941_v29  ;;  %2065 = vmatprep.subr.bf16.mxu1 %v2941_v29 }
  0xd1   : > { %1966 = vmatpush3.bf16.msra.mxu0 %v2941_v29  ;;  %2073 = vmatpush3.bf16.msra.mxu1 %v2941_v29 }
  0xd2   : > { %1967 = vmatprep.subr.bf16.mxu0 %v2947_v30  ;;  %2066 = vmatprep.subr.bf16.mxu1 %v2947_v30 }
  0xd5   : > { %1968 = vmatpush3.bf16.msra.mxu0 %v2947_v30  ;;  %2074 = vmatpush3.bf16.msra.mxu1 %v2947_v30 }
  0xd6   : > { %1969 = vmatprep.subr.bf16.mxu0 %v2953_v31  ;;  %2067 = vmatprep.subr.bf16.mxu1 %v2953_v31 }
  0xd9   : > { %1970 = vmatpush3.bf16.msra.mxu0 %v2953_v31  ;;  %2075 = vmatpush3.bf16.msra.mxu1 %v2953_v31 }
  0xda   : > { %1971 = vmatprep.subr.bf16.mxu0 %v2959_v32  ;;  %2068 = vmatprep.subr.bf16.mxu1 %v2959_v32 }
  0xdd   : > { %1972 = vmatpush3.bf16.msra.mxu0 %v2959_v32  ;;  %2076 = vmatpush3.bf16.msra.mxu1 %v2959_v32 }
  0xe0   : > { %1974 = vmatmul.mubr.bf16.vlgmr.msra.gmra.mrb[0].mxu0 %v2964_v33  ;;  %1982 = vmatmul.mubr.bf16.vlgmr.msra.gmra.mrb[0].mxu1 %v2967_v34 }
  0xe1   : > { %1977 = vmatprep.mubr.bf16.mxu0 %v2972_v35  ;;  %1985 = vmatprep.mubr.bf16.mxu1 %v2975_v36 }
  0xe8   : > { %1978 = vmatmul.mubr.bf16.gmra.mrb[4].mxu0 %v2984_v37  ;;  %1986 = vmatmul.mubr.bf16.gmra.mrb[4].mxu1 %v2987_v38 }
 0x1b3   : > { %v1975_v41 = vpop.f32.mrb[0].mxu0  ;;  %v1983_v42 = vpop.f32.mrb[0].mxu1 }
 0x1b4   : > { %v719_v43 = vmul.f32 %v1975_v41, %v2994_v39  ;;  %v727_v44 = vmul.f32 %v1983_v42, %v2994_v39  ;;  %v648_v45 = vpop.f32.mrb[1].mxu0  ;;  %v680_v46 = vpop.f32.mrb[1].mxu1 }
 0x1b5   : > { %v717_v47 = vmul.f32 %v2994_v39, %v648_v45  ;;  %v725_v48 = vmul.f32 %v2994_v39, %v680_v46  ;;  %v1976_v49 = vpop.f32.mrb[2].mxu0  ;;  %v1984_v50 = vpop.f32.mrb[2].mxu1 }
 0x1b6   : > { %v741_v51 = vadd.f32 %v2999_v40, %v719_v43  ;;  %v749_v52 = vadd.f32 %v2999_v40, %v727_v44  ;;  %v720_v53 = vmul.f32 %v1976_v49, %v2994_v39  ;;  %v728_v54 = vmul.f32 %v1984_v50, %v2994_v39  ;;  %v651_v55 = vpop.f32.mrb[3].mxu0  ;;  %v683_v56 = vpop.f32.mrb[3].mxu1 }
 0x1b7   : > { %v739_v57 = vadd.f32 %v2999_v40, %v717_v47  ;;  %v747_v58 = vadd.f32 %v2999_v40, %v725_v48  ;;  %v718_v59 = vmul.f32 %v2994_v39, %v651_v55  ;;  %v726_v60 = vmul.f32 %v2994_v39, %v683_v56 }
 0x1b8   : > { %v757_v61 = vmax.f32 %v741_v51, 0.0  ;;  %v765_v62 = vmax.f32 %v749_v52, 0.0  ;;  %v742_v63 = vadd.f32 %v2999_v40, %v720_v53  ;;  %v750_v0 = vadd.f32 %v2999_v40, %v728_v54 }
 0x1b9   : > { %v755_v41 = vmax.f32 %v739_v57, 0.0  ;;  %v763_v42 = vmax.f32 %v747_v58, 0.0  ;;  %v740_v43 = vadd.f32 %v2999_v40, %v718_v59  ;;  %v748_v44 = vadd.f32 %v2999_v40, %v726_v60 }
 0x1ba   : > { %774 = vst [vmem:[#allocation2 + $0x31] sm:$0xff] %v757_v61  ;;  %782 = vst [vmem:[#allocation2 + $0x91] sm:$0xff] %v765_v62  ;;  %v758_v45 = vmax.f32 %v742_v63, 0.0  ;;  %v766_v46 = vmax.f32 %v750_v0, 0.0 }
 0x1bb   : > { %772 = vst [vmem:[#allocation2 + $0x19] sm:$0xff] %v755_v41  ;;  %780 = vst [vmem:[#allocation2 + $0x79] sm:$0xff] %v763_v42  ;;  %v756_v47 = vmax.f32 %v740_v43, 0.0  ;;  %v764_v48 = vmax.f32 %v748_v44, 0.0  ;;  %v1979_v49 = vpop.f32.mrb[4].mxu0  ;;  %v1987_v50 = vpop.f32.mrb[4].mxu1 }
 0x1bc   : > { %775 = vst [vmem:[#allocation2 + $0x39] sm:$0xff] %v758_v45  ;;  %783 = vst [vmem:[#allocation2 + $0x99] sm:$0xff] %v766_v46  ;;  %v723_v51 = vmul.f32 %v1979_v49, %v2994_v39  ;;  %v731_v52 = vmul.f32 %v1987_v50, %v2994_v39  ;;  %v664_v53 = vpop.f32.mrb[5].mxu0  ;;  %v696_v54 = vpop.f32.mrb[5].mxu1 }
 0x1bd   : > { %773 = vst [vmem:[#allocation2 + $0x21] sm:$0xff] %v756_v47  ;;  %781 = vst [vmem:[#allocation2 + $0x81] sm:$0xff] %v764_v48  ;;  %v721_v55 = vmul.f32 %v2994_v39, %v664_v53  ;;  %v729_v56 = vmul.f32 %v2994_v39, %v696_v54  ;;  %v1980_v57 = vpop.f32.mrb[6].mxu0  ;;  %v1988_v58 = vpop.f32.mrb[6].mxu1 }
 0x1be   : > { %v745_v59 = vadd.f32 %v2999_v40, %v723_v51  ;;  %v753_v60 = vadd.f32 %v2999_v40, %v731_v52  ;;  %v724_v61 = vmul.f32 %v1980_v57, %v2994_v39  ;;  %v732_v62 = vmul.f32 %v1988_v58, %v2994_v39  ;;  %v667_v63 = vpop.f32.mrb[7].mxu0  ;;  %v699_v0 = vpop.f32.mrb[7].mxu1  ;;  %v2263_v58 = vld [vmem:[%s795_s3] sm:$0xff] (!%p1868_p4)  }
 0x1bf   : > { %v743_v41 = vadd.f32 %v2999_v40, %v721_v55  ;;  %v751_v42 = vadd.f32 %v2999_v40, %v729_v56  ;;  %v722_v43 = vmul.f32 %v2994_v39, %v667_v63  ;;  %v730_v44 = vmul.f32 %v2994_v39, %v699_v0  ;;  %791 = sbr.rel (%p1868_p4) target bundleno = 704 (0x2c0), region = 80 }
 0x1c0   : > { %v761_v45 = vmax.f32 %v745_v59, 0.0  ;;  %v769_v46 = vmax.f32 %v753_v60, 0.0  ;;  %v746_v47 = vadd.f32 %v2999_v40, %v724_v61  ;;  %v754_v48 = vadd.f32 %v2999_v40, %v732_v62 }
 0x1c1   : > { %v759_v49 = vmax.f32 %v743_v41, 0.0  ;;  %v767_v50 = vmax.f32 %v751_v42, 0.0  ;;  %v744_v51 = vadd.f32 %v2999_v40, %v722_v43  ;;  %v752_v52 = vadd.f32 %v2999_v40, %v730_v44 }
 0x1c2   : > { %778 = vst [vmem:[#allocation2 + $0x61] sm:$0xff] %v761_v45  ;;  %786 = vst [vmem:[#allocation2 + $0xc1] sm:$0xff] %v769_v46  ;;  %v762_v53 = vmax.f32 %v746_v47, 0.0  ;;  %v770_v54 = vmax.f32 %v754_v48, 0.0  ;;  %v2520_v57 = vmov (!%p1868_p4), 0.0  }
 0x1c3   : > { %776 = vst [vmem:[#allocation2 + $0x49] sm:$0xff] %v759_v49  ;;  %784 = vst [vmem:[#allocation2 + $0xa9] sm:$0xff] %v767_v50  ;;  %v760_v55 = vmax.f32 %v744_v51, 0.0  ;;  %v768_v56 = vmax.f32 %v752_v52, 0.0  ;;  %1989 = vmatprep.subr.bf16.mxu0 (!%p1868_p4), %v2520_v57  ;;  %2005 = vmatprep.mubr.msk.bf16.mxu0 (!%p1868_p4), %vm2521_vm0, %v2520_v57 }
 0x1c4   : > { %779 = vst [vmem:[#allocation2 + $0x69] sm:$0xff] %v762_v53  ;;  %787 = vst [vmem:[#allocation2 + $0xc9] sm:$0xff] %v770_v54  ;;  %1990 = vmatpush3.bf16.msra.mxu0 (!%p1868_p4), %v2906_v23 }
 0x1c5   : > { %777 = vst [vmem:[#allocation2 + $0x51] sm:$0xff] %v760_v55  ;;  %785 = vst [vmem:[#allocation2 + $0xb1] sm:$0xff] %v768_v56  ;;  %1991 = vmatprep.subr.bf16.mxu0 (!%p1868_p4), %v2520_v57 }
 0x1c8   : > { %1992 = vmatpush3.bf16.msra.mxu0 %v2908_v24 }
 0x1c9   : > { %1993 = vmatprep.subr.bf16.mxu0 %v2520_v57 }
 0x1cc   : > { %1994 = vmatpush3.bf16.msra.mxu0 %v2917_v25 }
 0x1cd   : > { %1995 = vmatprep.subr.bf16.mxu0 %v2520_v57 }
 0x1d0   : > { %1996 = vmatpush3.bf16.msra.mxu0 %v2933_v28 }
 0x1d1   : > { %1997 = vmatprep.subr.bf16.mxu0 %v2520_v57 }
 0x1d4   : > { %1998 = vmatpush3.bf16.msra.mxu0 %v2941_v29 }
 0x1d5   : > { %1999 = vmatprep.subr.bf16.mxu0 %v2520_v57 }
 0x1d8   : > { %2000 = vmatpush3.bf16.msra.mxu0 %v2947_v30 }
 0x1d9   : > { %2001 = vmatprep.subr.bf16.mxu0 %v2520_v57 }
 0x1dc   : > { %2002 = vmatpush3.bf16.msra.mxu0 %v2953_v31 }
 0x1dd   : > { %2003 = vmatprep.subr.bf16.mxu0 %v2520_v57 }
 0x1e0   : > { %2004 = vmatpush3.bf16.msra.mxu0 %v2959_v32 }
 0x1e3   : > { %2006 = vmatmul.mubr.bf16.vlgmr.msra.gmra.mrb[0].mxu0 %v2263_v58 }
 0x2b6   : > { %v838_v59 = vpop.f32.mrb[0].mxu0 }
 0x2b7   : > { %v845_v60 = vmul.f32 %v2994_v39, %v838_v59  ;;  %v2007_v61 = vpop.f32.mrb[1].mxu0 }
 0x2b8   : > { %v841_v62 = vpop.f32.mrb[2].mxu0 }
 0x2b9   : > { %v847_v63 = vadd.f32 %v2999_v40, %v845_v60  ;;  %v846_v0 = vmul.f32 %v2994_v39, %v841_v62  ;;  %v2008_v41 = vpop.f32.mrb[3].mxu0 }
 0x2bb   : > { %v849_v42 = vmax.f32 %v847_v63, 0.0  ;;  %v848_v43 = vadd.f32 %v2999_v40, %v846_v0 }
 0x2bd   : > { %851 = vst [vmem:[#allocation2 + $0x1] sm:$0xff] %v849_v42  ;;  %v850_v44 = vmax.f32 %v848_v43, 0.0 }
 0x2bf   : > { %852 = vst [vmem:[#allocation2 + $0x9] sm:$0xff] %v850_v44 }
 0x2c0 PF: > { %p1873_p3 = scmp.ne.s32.totalorder %s2493_s19, 0 }
 0x2c1   : > { %v2522_v45 = vmov (!%p1873_p3), 0.0  }
 0x2c2   : > { %856 = sbr.rel (%p1873_p3) target bundleno = 713 (0x2c9), region = 84  ;;  %857 = vst [vmem:[#allocation2 + $0x1] sm:$0xff] (!%p1873_p3), %v2522_v45  ;;  %858 = vst [vmem:[#allocation2 + $0x9] sm:$0xff] (!%p1873_p3), %v2522_v45 }
 0x2c9 PF: > { %p1874_p7 = scmp.ge.s32.totalorder %s2493_s19, 1 }
 0x2ca   : > { %v2523_v46 = vmov (!%p1874_p7), 0.0   ;;  %vm2524_vm1 = vmmov (!%p1874_p7), 0  }
 0x2cb   : > { %862 = sbr.rel (%p1874_p7) target bundleno = 968 (0x3c8), region = 88  ;;  %2009 = vmatprep.subr.bf16.mxu0 (!%p1874_p7), %v2523_v46  ;;  %2025 = vmatprep.mubr.msk.bf16.mxu0 (!%p1874_p7), %vm2524_vm1, %v2523_v46 }
 0x2cc   : > { %2010 = vmatpush3.bf16.msra.mxu0 (!%p1874_p7), %v2906_v23  ;;  %v2264_v23 = vld [vmem:[%s2921_s4 + $0x40] sm:$0xff] (!%p1874_p7)  }
 0x2cd   : > { %2011 = vmatprep.subr.bf16.mxu0 (!%p1874_p7), %v2523_v46 }
 0x2d0   : > { %2012 = vmatpush3.bf16.msra.mxu0 (!%p1874_p7), %v2908_v24 }
 0x2d1   : > { %2013 = vmatprep.subr.bf16.mxu0 (!%p1874_p7), %v2523_v46 }
 0x2d4   : > { %2014 = vmatpush3.bf16.msra.mxu0 %v2917_v25 }
 0x2d5   : > { %2015 = vmatprep.subr.bf16.mxu0 %v2523_v46 }
 0x2d8   : > { %2016 = vmatpush3.bf16.msra.mxu0 %v2933_v28 }
 0x2d9   : > { %2017 = vmatprep.subr.bf16.mxu0 %v2523_v46 }
 0x2dc   : > { %2018 = vmatpush3.bf16.msra.mxu0 %v2941_v29 }
 0x2dd   : > { %2019 = vmatprep.subr.bf16.mxu0 %v2523_v46 }
 0x2e0   : > { %2020 = vmatpush3.bf16.msra.mxu0 %v2947_v30 }
 0x2e1   : > { %2021 = vmatprep.subr.bf16.mxu0 %v2523_v46 }
 0x2e4   : > { %2022 = vmatpush3.bf16.msra.mxu0 %v2953_v31 }
 0x2e5   : > { %2023 = vmatprep.subr.bf16.mxu0 %v2523_v46 }
 0x2e8   : > { %2024 = vmatpush3.bf16.msra.mxu0 %v2959_v32 }
 0x2eb   : > { %2026 = vmatmul.mubr.bf16.vlgmr.msra.gmra.mrb[0].mxu0 %v2264_v23 }
 0x3be   : > { %v909_v24 = vpop.f32.mrb[0].mxu0 }
 0x3bf   : > { %v916_v25 = vmul.f32 %v2994_v39, %v909_v24  ;;  %v2027_v47 = vpop.f32.mrb[1].mxu0 }
 0x3c0   : > { %v912_v48 = vpop.f32.mrb[2].mxu0 }
 0x3c1   : > { %v918_v28 = vadd.f32 %v2999_v40, %v916_v25  ;;  %v917_v29 = vmul.f32 %v2994_v39, %v912_v48  ;;  %v2028_v49 = vpop.f32.mrb[3].mxu0 }
 0x3c3   : > { %v920_v50 = vmax.f32 %v918_v28, 0.0  ;;  %v919_v30 = vadd.f32 %v2999_v40, %v917_v29 }
 0x3c5   : > { %923 = vst [vmem:[#allocation2 + $0xd9] sm:$0xff] %v920_v50  ;;  %v921_v31 = vmax.f32 %v919_v30, 0.0 }
 0x3c7   : > { %924 = vst [vmem:[#allocation2 + $0xe1] sm:$0xff] %v921_v31 }
 0x3c8 PF: > { %p1880_p9 = scmp.ne.s32.totalorder %s2493_s19, 1 }
 0x3c9   : > { %v2525_v32 = vmov (!%p1880_p9), 0.0  }
 0x3ca   : > { %928 = sbr.rel (%p1880_p9) target bundleno = 977 (0x3d1), region = 92  ;;  %930 = vst [vmem:[#allocation2 + $0xd9] sm:$0xff] (!%p1880_p9), %v2525_v32  ;;  %931 = vst [vmem:[#allocation2 + $0xe1] sm:$0xff] (!%p1880_p9), %v2525_v32 }
 0x3d1 PF: > { %v1884_v51 = vcombine.low %v2864_v5, %v2866_v6  ;;  %v1885_v39 = vcombine.low %v2868_v7, %v2870_v8  ;;  %v948_v40 = vlaneseq  ;;  %v1886_v52 = vcombine.low %v2872_v9, %v2874_v10  ;;  %v932_v8 = vld [vmem:[#allocation2] sm:$0xff]  ;;  %v3129_v43 = vld [vmem:[#allocation2 + $0x18] sm:$0xff]  ;;  %v3150_v30 = vld [vmem:[#allocation2 + $0x30] sm:$0xff]  ;;  %s3819_s12 = sld [smem:[#allocation17_spill]]  ;;  %s1906_s8 = sshll.u32 %s2493_s19, 4 }
 0x3d2   : > { %v3079_v54 = vcombine.low %v2876_v11, %v2878_v12  ;;  %v3083_v5 = vcombine.low %v2880_v13, %v2882_v14  ;;  %v3087_v6 = vcombine.low %v2884_v15, %v2886_v16  ;;  %v3091_v7 = vcombine.low %v2888_v17, %v2890_v18  ;;  %v933_v14 = vld [vmem:[#allocation2 + $0x8] sm:$0xff]  ;;  %v3133_v46 = vld [vmem:[#allocation2 + $0x20] sm:$0xff]  ;;  %v3265_v33 = vld [vmem:[#allocation2 + $0x92] sm:$0xff]  ;;  %s1707_s13 = sshll.u32 %s3034_s6, 4  ;;  %s3822_s27 = sld [smem:[#allocation18_spill]]  ;;  %s3628_s13 = int_to_ptr.vmem [resolvable:$true] %s1707_s13 }
 0x3d3   : > { %2029 = vmatprep.subr.bf16.mxu0 %v1884_v51  ;;  %2077 = vmatprep.subr.bf16.mxu1 %v1884_v51  ;;  %v3075_v53 = vshrl.u32 %v948_v40, 7  ;;  %v3099_v13 = vcombine.low %v2892_v19, %v2894_v20  ;;  %v968_v15 = vld [vmem:[#allocation2 + $0x1] sm:$0xff]  ;;  %v969_v16 = vld [vmem:[#allocation2 + $0x9] sm:$0xff]  ;;  %v3137_v24 = vld [vmem:[#allocation2 + $0x19] sm:$0xff]  ;;  %s3823_s10 = sld [smem:[#allocation47_spill]]  ;;  %s3635_s20 = scalar_lea.sflag [#allocation5], %s433_s7 }
 0x3d4   : > { %2030 = vmatpush3.bf16.msra.mxu0 %v1884_v51  ;;  %2085 = vmatpush3.bf16.msra.mxu1 %v1884_v51  ;;  %v1020_v58 = vld [vmem:[#allocation2 + $0x2] sm:$0xff]  ;;  %v1021_v19 = vld [vmem:[#allocation2 + $0xa] sm:$0xff]  ;;  %v3146_v49 = vld [vmem:[#allocation2 + $0x1a] sm:$0xff]  ;;  %s2379_s9 = scalar_lea.vmem %s3628_s13, 2048  ;;  %s2526_s24 = smov [#allocation11]  }
 0x3d5   : > { %2031 = vmatprep.subr.bf16.mxu0 %v1885_v39  ;;  %2078 = vmatprep.subr.bf16.mxu1 %v1885_v39  ;;  %v950_v9 = vsub.s32 0, %v3075_v53  ;;  %v986_v10 = vsub.s32 1, %v3075_v53  ;;  %v1038_v11 = vsub.s32 2, %v3075_v53  ;;  %v1090_v12 = vsub.s32 3, %v3075_v53  ;;  %v3139_v25 = vld [vmem:[#allocation2 + $0x21] sm:$0xff]  ;;  %v3160_v40 = vld [vmem:[#allocation2 + $0x38] sm:$0xff]  ;;  %p2380_p13 = scmp.ne.s32.totalorder %s3628_s13, %s2379_s9 }
 0x3d6   : > { %v1142_v17 = vsub.s32 4, %v3075_v53  ;;  %v1194_v18 = vsub.s32 5, %v3075_v53  ;;  %v1247_v55 = vsub.s32 6, %v3075_v53  ;;  %v1299_v47 = vsub.s32 7, %v3075_v53  ;;  %v3148_v50 = vld [vmem:[#allocation2 + $0x22] sm:$0xff]  ;;  %v3227_v35 = vld [vmem:[#allocation2 + $0x79] sm:$0xff] }
 0x3d7   : > { %v3105_v56 = vrot.slane %v2850_v1, %v950_v9  ;;  %v3108_v57 = vrot.slane %v2850_v1, %v986_v10  ;;  %v3111_v20 = vrot.slane %v2850_v1, %v1038_v11  ;;  %v3114_v59 = vrot.slane %v2850_v1, %v1090_v12  ;;  %v3164_v53 = vld [vmem:[#allocation2 + $0x60] sm:$0xff]  ;;  %3799 = vst [vmem:[#allocation34_spill] sm:$0xff] %v3227_v35  ;;  %s1897_s11 = sshll.u32 %s3819_s12, 5  ;;  %s2383_s2 = sshll.u32 %s2526_s24, 4  ;;  %s2384_s2 = int_to_ptr.vmem [resolvable:$false] %s2383_s2 }
 0x3d8   : > { %2032 = vmatpush3.bf16.msra.mxu0 %v1885_v39  ;;  %2086 = vmatpush3.bf16.msra.mxu1 %v1885_v39  ;;  %v3117_v60 = vrot.slane %v2850_v1, %v1142_v17  ;;  %v3120_v61 = vrot.slane %v2850_v1, %v1194_v18  ;;  %v3123_v62 = vrot.slane %v2850_v1, %v1247_v55  ;;  %v3170_v12 = vld [vmem:[#allocation2 + $0x3a] sm:$0xff]  ;;  %v3189_v55 = vld [vmem:[#allocation2 + $0x69] sm:$0xff]  ;;  %s1704_s26 = sadd.s32 %s1906_s8, %s1897_s11  ;;  %p3824_p11 = scmp.ne.s32.totalorder %s3822_s27, 0 }
 0x3d9   : > { %2033 = vmatprep.subr.bf16.mxu0 %v1886_v52  ;;  %2079 = vmatprep.subr.bf16.mxu1 %v1886_v52  ;;  %v952_v63 = vmul.f32 %v3105_v56, %v932_v8  ;;  %v953_v0 = vmul.f32 %v3105_v56, %v933_v14  ;;  %v988_v41 = vmul.f32 %v3108_v57, %v968_v15  ;;  %v3172_v14 = vld [vmem:[#allocation2 + $0x68] sm:$0xff]  ;;  %v3225_v38 = vld [vmem:[#allocation2 + $0x80] sm:$0xff]  ;;  %s1898_s19 = sshll.u32 %s1704_s26, 7  ;;  %s2385_s30 = scalar_lea.vmem %s2384_s2, 4096 }
 0x3da   : > { %v989_v42 = vmul.f32 %v3108_v57, %v969_v16  ;;  %v1040_v44 = vmul.f32 %v3111_v20, %v1020_v58  ;;  %v1041_v45 = vmul.f32 %v3111_v20, %v1021_v19  ;;  %v1092_v23 = vmul.f32 %v3114_v59, %v3129_v43  ;;  %v3174_v15 = vld [vmem:[#allocation2 + $0x61] sm:$0xff]  ;;  %3798 = vst [vmem:[#allocation33_spill] sm:$0xff] %v3225_v38  ;;  %v3257_v22 = vld [vmem:[#allocation2 + $0x99] sm:$0xff]  ;;  %s3626_s28 = scalar_lea.hbm %s3823_s10, %s1898_s19  ;;  %p2381_p0 = pnand %p2380_p13, %p3824_p11 }
 0x3db   : > { %v1004_v48 = vadd.f32 %v988_v41, %v952_v63  ;;  %v1093_v29 = vmul.f32 %v3114_v59, %v3133_v46  ;;  %v1144_v31 = vmul.f32 %v3117_v60, %v3137_v24  ;;  %v1145_v32 = vmul.f32 %v3117_v60, %v3139_v25  ;;  %v3191_v58 = vld [vmem:[#allocation2 + $0x62] sm:$0xff]  ;;  %v3197_v63 = vld [vmem:[#allocation2 + $0x39] sm:$0xff]  ;;  %v3201_v41 = vld [vmem:[#allocation2 + $0x6a] sm:$0xff]  ;;  %p2386_p8 = scmp.lt.s32.totalorder %s3628_s13, %s2384_s2  ;;  %p2387_p12 = scmp.lt.s32.totalorder %s2385_s30, %s2379_s9 }
 0x3dc   : > { %2034 = vmatpush3.bf16.msra.mxu0 %v1886_v52  ;;  %2087 = vmatpush3.bf16.msra.mxu1 %v1886_v52  ;;  %v1005_v28 = vadd.f32 %v989_v42, %v953_v0  ;;  %v1196_v51 = vmul.f32 %v3120_v61, %v3146_v49  ;;  %v1197_v39 = vmul.f32 %v3120_v61, %v3148_v50  ;;  %v3162_v52 = vld [vmem:[#allocation2 + $0x32] sm:$0xff]  ;;  %v3229_v37 = vld [vmem:[#allocation2 + $0x81] sm:$0xff]  ;;  %p2382_p5 = pneg %p2381_p0 }
 0x3dd   : > { %2035 = vmatprep.subr.bf16.mxu0 %v3079_v54  ;;  %2080 = vmatprep.subr.bf16.mxu1 %v3079_v54  ;;  %v1056_v8 = vadd.f32 %v1040_v44, %v1004_v48  ;;  %v1249_v10 = vmul.f32 %v3123_v62, %v3150_v30  ;;  %v1250_v11 = vmul.f32 %v3123_v62, %v3160_v40  ;;  %v3237_v34 = vld [vmem:[#allocation2 + $0x7a] sm:$0xff]  ;;  %p2388_p2 = por %p2387_p12, %p2386_p8 }
 0x3de   : > { %v1057_v9 = vadd.f32 %v1041_v45, %v1005_v28  ;;  %v3179_v16 = vrot.slane %v2850_v1, %v1299_v47  ;;  %v3183_v17 = vmul.f32 %v2852_v2, %v3162_v52  ;;  %v3187_v18 = vmul.f32 %v2852_v2, %v3170_v12  ;;  %v3195_v1 = vld [vmem:[#allocation2 + $0x31] sm:$0xff]  ;;  %3800 = vst [vmem:[#allocation35_spill] sm:$0xff] %v3229_v37 }
 0x3df   : > { %v960_v0 = vmul.f32 %v3105_v56, %v3164_v53  ;;  %v961_v45 = vmul.f32 %v3105_v56, %v3172_v14  ;;  %v997_v28 = vmul.f32 %v3108_v57, %v3189_v55  ;;  %v1049_v36 = vmul.f32 %v3111_v20, %v3201_v41  ;;  %3801 = vst [vmem:[#allocation36_spill] sm:$0xff] %v3237_v34  ;;  %p2389_p6 = pnand %p2388_p2, %p2382_p5 }
 0x3e0   : > { %2036 = vmatpush3.bf16.msra.mxu0 %v3079_v54  ;;  %2088 = vmatpush3.bf16.msra.mxu1 %v3079_v54  ;;  %v1108_v54 = vadd.f32 %v1092_v23, %v1056_v8  ;;  %v1109_v19 = vadd.f32 %v1093_v29, %v1057_v9  ;;  %v1301_v42 = vmul.f32 %v3179_v16, %v3195_v1  ;;  %v3215_v8 = vld [vmem:[#allocation2 + $0x78] sm:$0xff] }
 0x3e1   : > { %2037 = vmatprep.subr.bf16.mxu0 %v3083_v5  ;;  %2081 = vmatprep.subr.bf16.mxu1 %v3083_v5  ;;  %v1302_v44 = vmul.f32 %v3179_v16, %v3197_v63  ;;  %v996_v23 = vmul.f32 %v3108_v57, %v3174_v15  ;;  %v1048_v29 = vmul.f32 %v3111_v20, %v3191_v58 }
 0x3e2   : > { %v1160_v47 = vadd.f32 %v1144_v31, %v1108_v54  ;;  %v1161_v48 = vadd.f32 %v1145_v32, %v1109_v19  ;;  %3797 = vst [vmem:[#allocation32_spill] sm:$0xff] %v3215_v8  ;;  %v1100_v31 = vmul.f32 %v3114_v59, %v3215_v8  ;;  %v1013_v19 = vadd.f32 %v997_v28, %v961_v45  ;;  %v3243_v28 = vld [vmem:[#allocation2 + $0x90] sm:$0xff] }
 0x3e3   : > { %v1012_v9 = vadd.f32 %v996_v23, %v960_v0  ;;  %v1101_v0 = vmul.f32 %v3114_v59, %v3225_v38  ;;  %v1152_v23 = vmul.f32 %v3117_v60, %v3227_v35  ;;  %v1153_v27 = vmul.f32 %v3117_v60, %v3229_v37 }
 0x3e4   : > { %2038 = vmatpush3.bf16.msra.mxu0 %v3083_v5  ;;  %2089 = vmatpush3.bf16.msra.mxu1 %v3083_v5  ;;  %v1212_v32 = vadd.f32 %v1196_v51, %v1160_v47  ;;  %v1213_v54 = vadd.f32 %v1197_v39, %v1161_v48  ;;  %v1065_v45 = vadd.f32 %v1049_v36, %v1013_v19  ;;  %v3239_v47 = vld [vmem:[#allocation2 + $0x82] sm:$0xff]  ;;  %v3255_v19 = vld [vmem:[#allocation2 + $0x91] sm:$0xff] }
 0x3e5   : > { %2039 = vmatprep.subr.bf16.mxu0 %v3087_v6  ;;  %2082 = vmatprep.subr.bf16.mxu1 %v3087_v6  ;;  %v1064_v5 = vadd.f32 %v1048_v29, %v1012_v9  ;;  %3802 = vst [vmem:[#allocation37_spill] sm:$0xff] %v3239_v47  ;;  %v1204_v48 = vmul.f32 %v3120_v61, %v3237_v34 }
 0x3e6   : > { %v1265_v51 = vadd.f32 %v1249_v10, %v1212_v32  ;;  %v1266_v39 = vadd.f32 %v1250_v11, %v1213_v54  ;;  %v1205_v9 = vmul.f32 %v3120_v61, %v3239_v47  ;;  %v1257_v10 = vmul.f32 %v3123_v62, %v3243_v28  ;;  %v3253_v54 = vld [vmem:[#allocation2 + $0x98] sm:$0xff] }
 0x3e7   : > { %v1116_v29 = vadd.f32 %v1100_v31, %v1064_v5  ;;  %v1117_v32 = vadd.f32 %v1101_v0, %v1065_v45  ;;  %v1258_v31 = vmul.f32 %v3123_v62, %v3253_v54  ;;  %v1309_v5 = vmul.f32 %v3179_v16, %v3255_v19 }
 0x3e8   : > { %2040 = vmatpush3.bf16.msra.mxu0 %v3087_v6  ;;  %2090 = vmatpush3.bf16.msra.mxu1 %v3087_v6  ;;  %v1317_v36 = vadd.f32 %v1301_v42, %v1265_v51  ;;  %v1318_v11 = vadd.f32 %v1302_v44, %v1266_v39  ;;  %v1310_v26 = vmul.f32 %v3179_v16, %v3257_v22  ;;  %v3269_v51 = vld [vmem:[#allocation2 + $0x9a] sm:$0xff] }
 0x3e9   : > { %2041 = vmatprep.subr.bf16.mxu0 %v3091_v7  ;;  %2083 = vmatprep.subr.bf16.mxu1 %v3091_v7  ;;  %v1168_v6 = vadd.f32 %v1152_v23, %v1116_v29  ;;  %v1169_v0 = vadd.f32 %v1153_v27, %v1117_v32  ;;  %v1361_v23 = vmul.f32 %v2852_v2, %v3265_v33 }
 0x3ea   : > { %v1369_v42 = vadd.f32 %v3183_v17, %v1317_v36  ;;  %v1370_v44 = vadd.f32 %v3187_v18, %v1318_v11  ;;  %v1362_v45 = vmul.f32 %v2852_v2, %v3269_v51  ;;  %v954_v29 = vmul.f32 %v3129_v43, %v3105_v56 }
 0x3eb   : > { %v1220_v39 = vadd.f32 %v1204_v48, %v1168_v6  ;;  %v1221_v18 = vadd.f32 %v1205_v9, %v1169_v0  ;;  %v990_v48 = vmul.f32 %v3137_v24, %v3108_v57  ;;  %v991_v11 = vmul.f32 %v3139_v25, %v3108_v57 }
 0x3ec   : > { %2042 = vmatpush3.bf16.msra.mxu0 %v3091_v7  ;;  %2091 = vmatpush3.bf16.msra.mxu1 %v3091_v7  ;;  %v1391_v27 = vmul.f32 %v2857_v3, %v1369_v42  ;;  %v1392_v17 = vmul.f32 %v2857_v3, %v1370_v44  ;;  %v955_v7 = vmul.f32 %v3133_v46, %v3105_v56 }
 0x3ed   : > { %2043 = vmatprep.subr.bf16.mxu0 %v3099_v13  ;;  %2084 = vmatprep.subr.bf16.mxu1 %v3099_v13  ;;  %v1273_v36 = vadd.f32 %v1257_v10, %v1220_v39  ;;  %v1274_v6 = vadd.f32 %v1258_v31, %v1221_v18  ;;  %v1042_v42 = vmul.f32 %v3146_v49, %v3111_v20 }
 0x3ee   : > { %v1413_v43 = vadd.f32 %v2862_v4, %v1391_v27  ;;  %v1414_v32 = vadd.f32 %v2862_v4, %v1392_v17  ;;  %v1006_v46 = vadd.f32 %v990_v48, %v954_v29  ;;  %v1007_v10 = vadd.f32 %v991_v11, %v955_v7  ;;  %v3313_v11 = vld [vmem:[#allocation2 + $0x50] sm:$0xff] }
 0x3ef   : > { %v1325_v9 = vadd.f32 %v1309_v5, %v1273_v36  ;;  %v1326_v0 = vadd.f32 %v1310_v26, %v1274_v6  ;;  %v1043_v25 = vmul.f32 %v3148_v50, %v3111_v20  ;;  %v1094_v31 = vmul.f32 %v3150_v30, %v3114_v59  ;;  %v3308_v36 = vld [vmem:[#allocation2 + $0x48] sm:$0xff] }
 0x3f0   : > { %2044 = vmatpush3.bf16.msra.mxu0 %v3099_v13  ;;  %2092 = vmatpush3.bf16.msra.mxu1 %v3099_v13  ;;  %v1429_v44 = vmax.f32 %v1413_v43, 0.0  ;;  %v1430_v24 = vmax.f32 %v1414_v32, 0.0  ;;  %v1058_v27 = vadd.f32 %v1042_v42, %v1006_v46  ;;  %v1095_v49 = vmul.f32 %v3160_v40, %v3114_v59  ;;  %v3317_v32 = vld [vmem:[#allocation2 + $0x49] sm:$0xff]  ;;  %v3322_v46 = vld [vmem:[#allocation2 + $0x51] sm:$0xff] }
 0x3f1   : > { %v1377_v39 = vadd.f32 %v1361_v23, %v1325_v9  ;;  %v1378_v18 = vadd.f32 %v1362_v45, %v1326_v0  ;;  %v1059_v13 = vadd.f32 %v1043_v25, %v1007_v10  ;;  %v1146_v5 = vmul.f32 %v3195_v1, %v3117_v60 }
 0x3f2   : > { %v1445_v17 = vpack.c.bf16 %v1430_v24, %v1429_v44  ;;  %v1110_v26 = vadd.f32 %v1094_v31, %v1058_v27  ;;  %v1147_v50 = vmul.f32 %v3197_v63, %v3117_v60  ;;  %v1198_v23 = vmul.f32 %v3162_v52, %v3120_v61  ;;  %v3326_v44 = vld [vmem:[#allocation2 + $0x4a] sm:$0xff] }
 0x3f3   : > { %v1399_v29 = vmul.f32 %v2857_v3, %v1377_v39  ;;  %v1400_v7 = vmul.f32 %v2857_v3, %v1378_v18  ;;  %v1111_v48 = vadd.f32 %v1095_v49, %v1059_v13  ;;  %v1199_v45 = vmul.f32 %v3170_v12, %v3120_v61  ;;  %v3331_v39 = vld [vmem:[#allocation2 + $0x52] sm:$0xff] }
 0x3f4   : > { %2045 = vmatprep.mubr.bf16.mxu0 %v1445_v17  ;;  %v1251_v43 = vmul.f32 %v3123_v62, %v3308_v36  ;;  %v1162_v42 = vadd.f32 %v1146_v5, %v1110_v26  ;;  %v1252_v9 = vmul.f32 %v3123_v62, %v3313_v11  ;;  %v1303_v10 = vmul.f32 %v3179_v16, %v3317_v32 }
 0x3f5   : > { %v1421_v6 = vadd.f32 %v2862_v4, %v1399_v29  ;;  %v1422_v24 = vadd.f32 %v2862_v4, %v1400_v7  ;;  %v1163_v0 = vadd.f32 %v1147_v50, %v1111_v48  ;;  %v1304_v25 = vmul.f32 %v3179_v16, %v3322_v46 }
 0x3f6   : > { %v1355_v27 = vmul.f32 %v2852_v2, %v3326_v44  ;;  %v1214_v49 = vadd.f32 %v1198_v23, %v1162_v42  ;;  %v1356_v17 = vmul.f32 %v2852_v2, %v3331_v39  ;;  %v962_v18 = vmul.f32 %v3215_v8, %v3105_v56 }
 0x3f7   : > { %v1437_v31 = vmax.f32 %v1421_v6, 0.0  ;;  %v1438_v13 = vmax.f32 %v1422_v24, 0.0  ;;  %v1215_v5 = vadd.f32 %v1199_v45, %v1163_v0  ;;  %v963_v29 = vmul.f32 %v3225_v38, %v3105_v56 }
 0x3f8   : > { %v998_v26 = vmul.f32 %v3227_v35, %v3108_v57  ;;  %v1267_v50 = vadd.f32 %v1251_v43, %v1214_v49  ;;  %v999_v7 = vmul.f32 %v3229_v37, %v3108_v57  ;;  %v1050_v23 = vmul.f32 %v3237_v34, %v3111_v20 }
 0x3f9   : > { %v1051_v48 = vmul.f32 %v3239_v47, %v3111_v20  ;;  %v1449_v6 = vpack.c.bf16 %v1438_v13, %v1437_v31  ;;  %v1268_v42 = vadd.f32 %v1252_v9, %v1215_v5  ;;  %v1102_v45 = vmul.f32 %v3243_v28, %v3114_v59  ;;  %v3359_v31 = vld [vmem:[#allocation2 + $0xa8] sm:$0xff]  ;;  %v3363_v5 = vld [vmem:[#allocation2 + $0xb0] sm:$0xff] }
 0x3fa   : > { %v1014_v24 = vadd.f32 %v998_v26, %v962_v18  ;;  %v1319_v0 = vadd.f32 %v1303_v10, %v1267_v50  ;;  %v1015_v21 = vadd.f32 %v999_v7, %v963_v29  ;;  %v1103_v43 = vmul.f32 %v3253_v54, %v3114_v59 }
 0x3fb   : > { %v1154_v49 = vmul.f32 %v3255_v19, %v3117_v60  ;;  %2053 = vmatprep.mubr.bf16.mxu1 %v1449_v6  ;;  %v1320_v37 = vadd.f32 %v1304_v25, %v1268_v42  ;;  %v1155_v47 = vmul.f32 %v3257_v22, %v3117_v60  ;;  %v1206_v9 = vmul.f32 %v3265_v33, %v3120_v61  ;;  %v3367_v25 = vld [vmem:[#allocation2 + $0xa9] sm:$0xff] }
 0x3fc   : > { %v1066_v34 = vadd.f32 %v1050_v23, %v1014_v24  ;;  %v1371_v18 = vadd.f32 %v1355_v27, %v1319_v0  ;;  %v1067_v10 = vadd.f32 %v1051_v48, %v1015_v21  ;;  %v1207_v13 = vmul.f32 %v3269_v51, %v3120_v61  ;;  %v3371_v23 = vld [vmem:[#allocation2 + $0xb1] sm:$0xff] }
 0x3fd   : > { %v1259_v29 = vmul.f32 %v3123_v62, %v3359_v31  ;;  %v1372_v26 = vadd.f32 %v1356_v17, %v1320_v37  ;;  %v1260_v7 = vmul.f32 %v3123_v62, %v3363_v5  ;;  %v1311_v21 = vmul.f32 %v3179_v16, %v3367_v25  ;;  %v3375_v27 = vld [vmem:[#allocation2 + $0xaa] sm:$0xff]  ;;  %v3380_v24 = vld [vmem:[#allocation2 + $0xb2] sm:$0xff] }
 0x3fe   : > { %v1118_v50 = vadd.f32 %v1102_v45, %v1066_v34  ;;  %v1393_v48 = vmul.f32 %v2857_v3, %v1371_v18  ;;  %v1119_v6 = vadd.f32 %v1103_v43, %v1067_v10  ;;  %v1312_v42 = vmul.f32 %v3179_v16, %v3371_v23  ;;  %3803 = vst [vmem:[#allocation38_spill] sm:$0xff] %v3380_v24 }
 0x3ff   : > { %v1363_v34 = vmul.f32 %v2852_v2, %v3375_v27  ;;  %v1394_v37 = vmul.f32 %v2857_v3, %v1372_v26  ;;  %v1364_v45 = vmul.f32 %v2852_v2, %v3380_v24  ;;  %v956_v0 = vmul.f32 %v3150_v30, %v3105_v56 }
 0x400   : > { %v1170_v17 = vadd.f32 %v1154_v49, %v1118_v50  ;;  %v1415_v18 = vadd.f32 %v2862_v4, %v1393_v48  ;;  %v1171_v43 = vadd.f32 %v1155_v47, %v1119_v6  ;;  %v957_v10 = vmul.f32 %v3160_v40, %v3105_v56 }
 0x401   : > { %v992_v35 = vmul.f32 %v3195_v1, %v3108_v57  ;;  %v1416_v38 = vadd.f32 %v2862_v4, %v1394_v37  ;;  %v993_v49 = vmul.f32 %v3197_v63, %v3108_v57  ;;  %v1044_v26 = vmul.f32 %v3162_v52, %v3111_v20 }
 0x402   : > { %v1222_v8 = vadd.f32 %v1206_v9, %v1170_v17  ;;  %v1431_v50 = vmax.f32 %v1415_v18, 0.0  ;;  %v1223_v30 = vadd.f32 %v1207_v13, %v1171_v43  ;;  %v1045_v47 = vmul.f32 %v3170_v12, %v3111_v20 }
 0x403   : > { %v1008_v24 = vadd.f32 %v992_v35, %v956_v0  ;;  %v1432_v48 = vmax.f32 %v1416_v38, 0.0  ;;  %v1009_v6 = vadd.f32 %v993_v49, %v957_v10  ;;  %v1096_v1 = vmul.f32 %v3308_v36, %v3114_v59 }
 0x404   : > { %v1275_v40 = vadd.f32 %v1259_v29, %v1222_v8  ;;  %v1276_v37 = vadd.f32 %v1260_v7, %v1223_v30  ;;  %v1097_v63 = vmul.f32 %v3313_v11, %v3114_v59  ;;  %v1148_v52 = vmul.f32 %v3317_v32, %v3117_v60 }
 0x405   : > { %v1060_v9 = vadd.f32 %v1044_v26, %v1008_v24  ;;  %v1446_v17 = vpack.c.bf16 %v1432_v48, %v1431_v50  ;;  %v1061_v35 = vadd.f32 %v1045_v47, %v1009_v6  ;;  %v1149_v12 = vmul.f32 %v3322_v46, %v3117_v60 }
 0x406   : > { %v1327_v13 = vadd.f32 %v1311_v21, %v1275_v40  ;;  %v1328_v38 = vadd.f32 %v1312_v42, %v1276_v37  ;;  %v1200_v29 = vmul.f32 %v3326_v44, %v3120_v61  ;;  %v1201_v7 = vmul.f32 %v3331_v39, %v3120_v61 }
 0x407   : > { %v1112_v8 = vadd.f32 %v1096_v1, %v1060_v9  ;;  %2046 = vmatmul.mubr.bf16.vlgmr.msra.gmra.mrb[0].mxu0 %v1446_v17  ;;  %v1113_v0 = vadd.f32 %v1097_v63, %v1061_v35  ;;  %v1253_v18 = vmul.f32 %v3123_v62, %v3164_v53  ;;  %v1254_v21 = vmul.f32 %v3123_v62, %v3172_v14 }
 0x408   : > { %v1379_v24 = vadd.f32 %v1363_v34, %v1327_v13  ;;  %v1380_v43 = vadd.f32 %v1364_v45, %v1328_v38  ;;  %v1305_v42 = vmul.f32 %v3179_v16, %v3174_v15  ;;  %v1306_v49 = vmul.f32 %v3179_v16, %v3189_v55 }
 0x409   : > { %v1164_v10 = vadd.f32 %v1148_v52, %v1112_v8  ;;  %v1165_v50 = vadd.f32 %v1149_v12, %v1113_v0  ;;  %v1357_v34 = vmul.f32 %v2852_v2, %v3191_v58  ;;  %v1358_v30 = vmul.f32 %v2852_v2, %v3201_v41 }
 0x40a   : > { %v1401_v26 = vmul.f32 %v2857_v3, %v1379_v24  ;;  %v1402_v47 = vmul.f32 %v2857_v3, %v1380_v43  ;;  %v964_v45 = vmul.f32 %v3243_v28, %v3105_v56  ;;  %v965_v40 = vmul.f32 %v3253_v54, %v3105_v56 }
 0x40b   : > { %v1216_v48 = vadd.f32 %v1200_v29, %v1164_v10  ;;  %v1217_v1 = vadd.f32 %v1201_v7, %v1165_v50  ;;  %v1000_v37 = vmul.f32 %v3255_v19, %v3108_v57  ;;  %v1001_v9 = vmul.f32 %v3257_v22, %v3108_v57 }
 0x40c   : > { %v1423_v6 = vadd.f32 %v2862_v4, %v1401_v26  ;;  %v1424_v63 = vadd.f32 %v2862_v4, %v1402_v47  ;;  %v1052_v17 = vmul.f32 %v3265_v33, %v3111_v20  ;;  %v1053_v28 = vmul.f32 %v3269_v51, %v3111_v20  ;;  %v3804_v26 = vld [vmem:[#allocation38_spill] sm:$0xff]  ;;  %v3455_v47 = vld [vmem:[#allocation2 + $0xc8] sm:$0xff] }
 0x40d   : > { %v1269_v52 = vadd.f32 %v1253_v18, %v1216_v48  ;;  %v1270_v54 = vadd.f32 %v1254_v21, %v1217_v1  ;;  %v1016_v35 = vadd.f32 %v1000_v37, %v964_v45  ;;  %v1017_v12 = vadd.f32 %v1001_v9, %v965_v40  ;;  %v3457_v48 = vld [vmem:[#allocation2 + $0xc1] sm:$0xff]  ;;  %v3464_v40 = vld [vmem:[#allocation2 + $0xc9] sm:$0xff] }
 0x40e   : > { %v1439_v13 = vmax.f32 %v1423_v6, 0.0  ;;  %v1440_v38 = vmax.f32 %v1424_v63, 0.0  ;;  %v1104_v19 = vmul.f32 %v3359_v31, %v3114_v59  ;;  %v1105_v22 = vmul.f32 %v3363_v5, %v3114_v59 }
 0x40f   : > { %v1321_v8 = vadd.f32 %v1305_v42, %v1269_v52  ;;  %v1322_v29 = vadd.f32 %v1306_v49, %v1270_v54  ;;  %v1068_v7 = vadd.f32 %v1052_v17, %v1016_v35  ;;  %v1069_v24 = vadd.f32 %v1053_v28, %v1017_v12  ;;  %v3453_v49 = vld [vmem:[#allocation2 + $0xc0] sm:$0xff]  ;;  %v3473_v17 = vld [vmem:[#allocation2 + $0xca] sm:$0xff] }
 0x410   : > { %v1156_v33 = vmul.f32 %v3367_v25, %v3117_v60  ;;  %v1450_v0 = vpack.c.bf16 %v1440_v38, %v1439_v13  ;;  %v1157_v18 = vmul.f32 %v3371_v23, %v3117_v60  ;;  %v1208_v21 = vmul.f32 %v3375_v27, %v3120_v61  ;;  %v3471_v52 = vld [vmem:[#allocation2 + $0xc2] sm:$0xff] }
 0x411   : > { %v1373_v51 = vadd.f32 %v1357_v34, %v1321_v8  ;;  %v1374_v43 = vadd.f32 %v1358_v30, %v1322_v29  ;;  %v1120_v10 = vadd.f32 %v1104_v19, %v1068_v7  ;;  %v1121_v42 = vadd.f32 %v1105_v22, %v1069_v24 }
 0x412   : > { %v1209_v50 = vmul.f32 %v3804_v26, %v3120_v61  ;;  %2054 = vmatmul.mubr.bf16.vlgmr.msra.gmra.mrb[0].mxu1 %v1450_v0  ;;  %v1261_v45 = vmul.f32 %v3123_v62, %v3453_v49  ;;  %v1262_v30 = vmul.f32 %v3123_v62, %v3455_v47  ;;  %v1313_v6 = vmul.f32 %v3179_v16, %v3457_v48 }
 0x413   : > { %v1395_v34 = vmul.f32 %v2857_v3, %v1373_v51  ;;  %v1396_v1 = vmul.f32 %v2857_v3, %v1374_v43  ;;  %v1172_v37 = vadd.f32 %v1156_v33, %v1120_v10  ;;  %v1173_v9 = vadd.f32 %v1157_v18, %v1121_v42 }
 0x414   : > { %v1314_v63 = vmul.f32 %v3179_v16, %v3464_v40  ;;  %v1365_v13 = vmul.f32 %v2852_v2, %v3471_v52  ;;  %v1366_v54 = vmul.f32 %v2852_v2, %v3473_v17  ;;  %v958_v35 = vmul.f32 %v3308_v36, %v3105_v56 }
 0x415   : > { %v1417_v28 = vadd.f32 %v2862_v4, %v1395_v34  ;;  %v1418_v12 = vadd.f32 %v2862_v4, %v1396_v1  ;;  %v1224_v38 = vadd.f32 %v1208_v21, %v1172_v37  ;;  %v1225_v8 = vadd.f32 %v1209_v50, %v1173_v9 }
 0x416   : > { %v959_v19 = vmul.f32 %v3313_v11, %v3105_v56  ;;  %v994_v29 = vmul.f32 %v3317_v32, %v3108_v57  ;;  %v995_v7 = vmul.f32 %v3322_v46, %v3108_v57  ;;  %v1046_v24 = vmul.f32 %v3326_v44, %v3111_v20 }
 0x417   : > { %v1433_v22 = vmax.f32 %v1417_v28, 0.0  ;;  %v1434_v33 = vmax.f32 %v1418_v12, 0.0  ;;  %v1277_v0 = vadd.f32 %v1261_v45, %v1224_v38  ;;  %v1278_v36 = vadd.f32 %v1262_v30, %v1225_v8  ;;  %v3805_v30 = vld [vmem:[#allocation32_spill] sm:$0xff]  ;;  %v3810_v8 = vld [vmem:[#allocation37_spill] sm:$0xff] }
 0x418   : > { %v1047_v51 = vmul.f32 %v3331_v39, %v3111_v20  ;;  %v1010_v18 = vadd.f32 %v994_v29, %v958_v35  ;;  %v1011_v21 = vadd.f32 %v995_v7, %v959_v19  ;;  %v1098_v11 = vmul.f32 %v3114_v59, %v3164_v53  ;;  %v3809_v35 = vld [vmem:[#allocation36_spill] sm:$0xff] }
 0x419   : > { %v1099_v32 = vmul.f32 %v3114_v59, %v3172_v14  ;;  %v1447_v43 = vpack.c.bf16 %v1434_v33, %v1433_v22  ;;  %v1329_v10 = vadd.f32 %v1313_v6, %v1277_v0  ;;  %v1330_v46 = vadd.f32 %v1314_v63, %v1278_v36  ;;  %v3807_v63 = vld [vmem:[#allocation34_spill] sm:$0xff] }
 0x41a   : > { %v1150_v44 = vmul.f32 %v3117_v60, %v3174_v15  ;;  %v1062_v42 = vadd.f32 %v1046_v24, %v1010_v18  ;;  %v1063_v50 = vadd.f32 %v1047_v51, %v1011_v21  ;;  %v1151_v34 = vmul.f32 %v3117_v60, %v3189_v55  ;;  %v3806_v15 = vld [vmem:[#allocation33_spill] sm:$0xff] }
 0x41b   : > { %v1202_v39 = vmul.f32 %v3120_v61, %v3191_v58  ;;  %2049 = vmatprep.mubr.bf16.mxu0 %v1447_v43  ;;  %v1381_v45 = vadd.f32 %v1365_v13, %v1329_v10  ;;  %v1382_v53 = vadd.f32 %v1366_v54, %v1330_v46  ;;  %v1203_v14 = vmul.f32 %v3120_v61, %v3201_v41  ;;  %v3808_v13 = vld [vmem:[#allocation35_spill] sm:$0xff] }
 0x41c   : > { %v1255_v6 = vmul.f32 %v3123_v62, %v3805_v30  ;;  %v1114_v1 = vadd.f32 %v1098_v11, %v1062_v42  ;;  %v1115_v37 = vadd.f32 %v1099_v32, %v1063_v50  ;;  %v1256_v9 = vmul.f32 %v3123_v62, %v3806_v15  ;;  %v1296_v30 = vld [vmem:[#allocation2 + $0xe1] sm:$0xff] }
 0x41d   : > { %v1307_v55 = vmul.f32 %v3179_v16, %v3807_v63  ;;  %v1403_v28 = vmul.f32 %v2857_v3, %v1381_v45  ;;  %v1404_v58 = vmul.f32 %v2857_v3, %v1382_v53  ;;  %v1308_v54 = vmul.f32 %v3179_v16, %v3808_v13 }
 0x41e   : > { %v1359_v41 = vmul.f32 %v2852_v2, %v3809_v35  ;;  %v1166_v12 = vadd.f32 %v1150_v44, %v1114_v1  ;;  %v1167_v38 = vadd.f32 %v1151_v34, %v1115_v37  ;;  %v1360_v19 = vmul.f32 %v2852_v2, %v3810_v8  ;;  %v1244_v34 = vld [vmem:[#allocation2 + $0xe0] sm:$0xff] }
 0x41f   : > { %v966_v22 = vmul.f32 %v3359_v31, %v3105_v56  ;;  %v1425_v29 = vadd.f32 %v2862_v4, %v1403_v28  ;;  %v1426_v7 = vadd.f32 %v2862_v4, %v1404_v58  ;;  %v967_v24 = vmul.f32 %v3363_v5, %v3105_v56 }
 0x420   : > { %v1002_v33 = vmul.f32 %v3367_v25, %v3108_v57  ;;  %v1218_v0 = vadd.f32 %v1202_v39, %v1166_v12  ;;  %v1219_v36 = vadd.f32 %v1203_v14, %v1167_v38  ;;  %v1003_v51 = vmul.f32 %v3371_v23, %v3108_v57 }
 0x421   : > { %v1054_v18 = vmul.f32 %v3375_v27, %v3111_v20  ;;  %v1441_v21 = vmax.f32 %v1425_v29, 0.0  ;;  %v1442_v31 = vmax.f32 %v1426_v7, 0.0  ;;  %v1055_v32 = vmul.f32 %v3804_v26, %v3111_v20  ;;  %v1243_v26 = vld [vmem:[#allocation2 + $0xd8] sm:$0xff] }
 0x422   : > { %v1018_v11 = vadd.f32 %v1002_v33, %v966_v22  ;;  %v1271_v43 = vadd.f32 %v1255_v6, %v1218_v0  ;;  %v1272_v10 = vadd.f32 %v1256_v9, %v1219_v36  ;;  %v1019_v56 = vadd.f32 %v1003_v51, %v967_v24  ;;  %v1348_v9 = vld [vmem:[#allocation2 + $0xe2] sm:$0xff] }
 0x423   : > { %v1106_v5 = vmul.f32 %v3453_v49, %v3114_v59  ;;  %v1451_v25 = vpack.c.bf16 %v1442_v31, %v1441_v21  ;;  %v1107_v57 = vmul.f32 %v3455_v47, %v3114_v59  ;;  %v1158_v23 = vmul.f32 %v3457_v48, %v3117_v60  ;;  %v1295_v47 = vld [vmem:[#allocation2 + $0xd9] sm:$0xff] }
 0x424   : > { %v1070_v46 = vadd.f32 %v1054_v18, %v1018_v11  ;;  %v1323_v27 = vadd.f32 %v1307_v55, %v1271_v43  ;;  %v1324_v44 = vadd.f32 %v1308_v54, %v1272_v10  ;;  %v1071_v42 = vadd.f32 %v1055_v32, %v1019_v56  ;;  %v3812_v18 = vld [vmem:[#allocation26_spill] sm:$0xff]  ;;  %v3813_v32 = vld [vmem:[#allocation24_spill] sm:$0xff]  ;;  %v3814_v10 = vld [vmem:[#allocation23_spill] sm:$0xff] }
 0x425   : > { %v1159_v20 = vmul.f32 %v3464_v40, %v3117_v60  ;;  %2057 = vmatprep.mubr.bf16.mxu1 %v1451_v25  ;;  %v1210_v49 = vmul.f32 %v3471_v52, %v3120_v61  ;;  %v1211_v59 = vmul.f32 %v3473_v17, %v3120_v61  ;;  %v1263_v14 = vmul.f32 %v3123_v62, %v1243_v26  ;;  %v1347_v52 = vld [vmem:[#allocation2 + $0xda] sm:$0xff] }
 0x426   : > { %v1122_v50 = vadd.f32 %v1106_v5, %v1070_v46  ;;  %v1375_v39 = vadd.f32 %v1359_v41, %v1323_v27  ;;  %v1376_v45 = vadd.f32 %v1360_v19, %v1324_v44  ;;  %v1123_v53 = vadd.f32 %v1107_v57, %v1071_v42 }
 0x427   : > { %v1264_v1 = vmul.f32 %v3123_v62, %v1244_v34  ;;  %v1315_v15 = vmul.f32 %v3179_v16, %v1295_v47  ;;  %v1316_v55 = vmul.f32 %v3179_v16, %v1296_v30  ;;  %v1367_v58 = vmul.f32 %v2852_v2, %v1347_v52  ;;  %v3816_v47 = vld [vmem:[#allocation25_spill] sm:$0xff] }
 0x428   : > { %v1174_v48 = vadd.f32 %v1158_v23, %v1122_v50  ;;  %v1397_v60 = vmul.f32 %v2857_v3, %v1375_v39  ;;  %v1398_v40 = vmul.f32 %v2857_v3, %v1376_v45  ;;  %v1175_v6 = vadd.f32 %v1159_v20, %v1123_v53  ;;  %v3815_v39 = vld [vmem:[#allocation27_spill] sm:$0xff] }
 0x429   : > { %v1368_v62 = vmul.f32 %v2852_v2, %v1348_v9  ;;  %v3811_v2 = vld [vmem:[#allocation22_spill] sm:$0xff]  ;;  %v1644_v21 = vunpack.c.l.bf16 %v3812_v18  ;;  %v1645_v5 = vunpack.c.h.bf16 %v3812_v18  ;;  %v1643_v23 = vunpack.c.h.bf16 %v3813_v32 }
 0x42a   : > { %v1226_v37 = vadd.f32 %v1210_v49, %v1174_v48  ;;  %v1419_v63 = vadd.f32 %v2862_v4, %v1397_v60  ;;  %v1420_v61 = vadd.f32 %v2862_v4, %v1398_v40  ;;  %v1227_v17 = vadd.f32 %v1211_v59, %v1175_v6 }
 0x42b   : > { %v1652_v45 = vunpack.c.l.bf16 %v3815_v39  ;;  %v1650_v48 = vunpack.c.l.bf16 %v3816_v47  ;;  %v1653_v40 = vunpack.c.h.bf16 %v3815_v39 }
 0x42c   : > { %v1279_v28 = vadd.f32 %v1263_v14, %v1226_v37  ;;  %v1435_v13 = vmax.f32 %v1419_v63, 0.0  ;;  %v1436_v54 = vmax.f32 %v1420_v61, 0.0  ;;  %v1280_v35 = vadd.f32 %v1264_v1, %v1227_v17 }
 0x42d   : > { %v1651_v37 = vunpack.c.h.bf16 %v3816_v47 }
 0x42e   : > { %v1331_v41 = vadd.f32 %v1315_v15, %v1279_v28  ;;  %v1448_v12 = vpack.c.bf16 %v1436_v54, %v1435_v13  ;;  %v1332_v38 = vadd.f32 %v1316_v55, %v1280_v35  ;;  %v3817_v13 = vld [vmem:[#allocation30_spill] sm:$0xff] }
 0x42f   : > { %v1648_v54 = vunpack.c.l.bf16 %v3817_v13 }
 0x430   : > { %v1383_v8 = vadd.f32 %v1367_v58, %v1331_v41  ;;  %2050 = vmatmul.mubr.bf16.gmra.mrb[4].mxu0 %v1448_v12  ;;  %v1384_v19 = vadd.f32 %v1368_v62, %v1332_v38  ;;  %v3818_v41 = vld [vmem:[#allocation28_spill] sm:$0xff] }
 0x431   : > { %v1646_v12 = vunpack.c.l.bf16 %v3818_v41 }
 0x432   : > { %v1405_v22 = vmul.f32 %v2857_v3, %v1383_v8  ;;  %v1406_v29 = vmul.f32 %v2857_v3, %v1384_v19  ;;  %v1642_v3 = vunpack.c.l.bf16 %v3813_v32  ;;  %v3820_v32 = vld [vmem:[#allocation31_spill] sm:$0xff] }
 0x434   : > { %v1427_v16 = vadd.f32 %v2862_v4, %v1405_v22  ;;  %v1428_v7 = vadd.f32 %v2862_v4, %v1406_v29  ;;  %v1649_v22 = vunpack.c.h.bf16 %v3817_v13 }
 0x436   : > { %v1443_v24 = vmax.f32 %v1427_v16, 0.0  ;;  %v1444_v33 = vmax.f32 %v1428_v7, 0.0 }
 0x438   : > { %v1452_v0 = vpack.c.bf16 %v1444_v33, %v1443_v24  ;;  %v1647_v24 = vunpack.c.h.bf16 %v3818_v41 }
 0x43a   : > { %2058 = vmatmul.mubr.bf16.gmra.mrb[4].mxu1 %v1452_v0 }
 0x4da   : > { %v2047_v36 = vpop.f32.mrb[0].mxu0 }
 0x4db   : > { %v1606_v51 = vmul.f32 %v2047_v36, %v3811_v2  ;;  %v1535_v31 = vpop.f32.mrb[1].mxu0 }
 0x4dc   : > { %v1604_v11 = vmul.f32 %v3811_v2, %v1535_v31  ;;  %v2048_v43 = vpop.f32.mrb[2].mxu0 }
 0x4dd   : > { %v1628_v4 = vadd.f32 %v3814_v10, %v1606_v51  ;;  %v1607_v56 = vmul.f32 %v2048_v43, %v3811_v2  ;;  %v1538_v25 = vpop.f32.mrb[3].mxu0 }
 0x4de   : > { %v1626_v46 = vadd.f32 %v3814_v10, %v1604_v11  ;;  %v1605_v57 = vmul.f32 %v3811_v2, %v1538_v25 }
 0x4df   : > { %v1660_v27 = vadd.f32 %v1644_v21, %v1628_v4  ;;  %v1629_v44 = vadd.f32 %v3814_v10, %v1607_v56  ;;  %v3821_v56 = vld [vmem:[#allocation29_spill] sm:$0xff] }
 0x4e0   : > { %v1658_v42 = vadd.f32 %v1642_v3, %v1626_v46  ;;  %v1627_v20 = vadd.f32 %v3814_v10, %v1605_v57  ;;  %v1656_v3 = vunpack.c.l.bf16 %v3820_v32 }
 0x4e1   : > { %1676 = vst [vmem:[%s3034_s6 + $0x10] sm:$0xff] %v1660_v27  ;;  %v1661_v26 = vadd.f32 %v1645_v5, %v1629_v44  ;;  %v1654_v5 = vunpack.c.l.bf16 %v3821_v56 }
 0x4e2   : > { %1674 = vst [vmem:[%s3034_s6] sm:$0xff] %v1658_v42  ;;  %v1659_v50 = vadd.f32 %v1643_v23, %v1627_v20  ;;  %v1657_v23 = vunpack.c.h.bf16 %v3820_v32  ;;  %v1655_v20 = vunpack.c.h.bf16 %v3821_v56 }
 0x4e3   : > { %1677 = vst [vmem:[%s3034_s6 + $0x18] sm:$0xff] %v1661_v26 }
 0x4e4   : > { %1675 = vst [vmem:[%s3034_s6 + $0x8] sm:$0xff] %v1659_v50 }
 0x4e5   : > { %v2055_v49 = vpop.f32.mrb[0].mxu1 }
 0x4e6   : > { %v1614_v34 = vmul.f32 %v2055_v49, %v3811_v2  ;;  %v1567_v53 = vpop.f32.mrb[1].mxu1 }
 0x4e7   : > { %v1612_v59 = vmul.f32 %v3811_v2, %v1567_v53  ;;  %v2056_v14 = vpop.f32.mrb[2].mxu1 }
 0x4e8   : > { %v1636_v30 = vadd.f32 %v3814_v10, %v1614_v34  ;;  %v1615_v60 = vmul.f32 %v2056_v14, %v3811_v2  ;;  %v1570_v6 = vpop.f32.mrb[3].mxu1 }
 0x4e9   : > { %v1634_v1 = vadd.f32 %v3814_v10, %v1612_v59  ;;  %v1613_v52 = vmul.f32 %v3811_v2, %v1570_v6 }
 0x4ea   : > { %v1668_v15 = vadd.f32 %v1652_v45, %v1636_v30  ;;  %v1637_v9 = vadd.f32 %v3814_v10, %v1615_v60 }
 0x4eb   : > { %v1666_v63 = vadd.f32 %v1650_v48, %v1634_v1  ;;  %v1635_v61 = vadd.f32 %v3814_v10, %v1613_v52 }
 0x4ec   : > { %1684 = vst [vmem:[%s3034_s6 + $0x50] sm:$0xff] %v1668_v15  ;;  %v1669_v17 = vadd.f32 %v1653_v40, %v1637_v9 }
 0x4ed   : > { %1682 = vst [vmem:[%s3034_s6 + $0x40] sm:$0xff] %v1666_v63  ;;  %v1667_v55 = vadd.f32 %v1651_v37, %v1635_v61 }
 0x4ee   : > { %1685 = vst [vmem:[%s3034_s6 + $0x58] sm:$0xff] %v1669_v17 }
 0x4ef   : > { %1683 = vst [vmem:[%s3034_s6 + $0x48] sm:$0xff] %v1667_v55 }
 0x503   : > { %v2051_v28 = vpop.f32.mrb[4].mxu0 }
 0x504   : > { %v1610_v58 = vmul.f32 %v2051_v28, %v3811_v2  ;;  %v1551_v35 = vpop.f32.mrb[5].mxu0 }
 0x505   : > { %v1608_v62 = vmul.f32 %v3811_v2, %v1551_v35  ;;  %v2052_v38 = vpop.f32.mrb[6].mxu0 }
 0x506   : > { %v1632_v8 = vadd.f32 %v3814_v10, %v1610_v58  ;;  %v1611_v19 = vmul.f32 %v2052_v38, %v3811_v2  ;;  %v1554_v29 = vpop.f32.mrb[7].mxu0 }
 0x507   : > { %v1630_v16 = vadd.f32 %v3814_v10, %v1608_v62  ;;  %v1609_v7 = vmul.f32 %v3811_v2, %v1554_v29 }
 0x508   : > { %v1664_v33 = vadd.f32 %v1648_v54, %v1632_v8  ;;  %v1633_v0 = vadd.f32 %v3814_v10, %v1611_v19 }
 0x509   : > { %v1662_v36 = vadd.f32 %v1646_v12, %v1630_v16  ;;  %v1631_v51 = vadd.f32 %v3814_v10, %v1609_v7 }
 0x50a   : > { %1680 = vst [vmem:[%s3034_s6 + $0x30] sm:$0xff] %v1664_v33  ;;  %v1665_v18 = vadd.f32 %v1649_v22, %v1633_v0 }
 0x50b   : > { %1678 = vst [vmem:[%s3034_s6 + $0x20] sm:$0xff] %v1662_v36  ;;  %v1663_v21 = vadd.f32 %v1647_v24, %v1631_v51 }
 0x50c   : > { %1681 = vst [vmem:[%s3034_s6 + $0x38] sm:$0xff] %v1665_v18 }
 0x50d   : > { %v2059_v31 = vpop.f32.mrb[4].mxu1  ;;  %1679 = vst [vmem:[%s3034_s6 + $0x28] sm:$0xff] %v1663_v21 }
 0x50e   : > { %v1618_v11 = vmul.f32 %v2059_v31, %v3811_v2  ;;  %v1583_v43 = vpop.f32.mrb[5].mxu1 }
 0x50f   : > { %v1616_v4 = vmul.f32 %v3811_v2, %v1583_v43  ;;  %v2060_v25 = vpop.f32.mrb[6].mxu1 }
 0x510   : > { %v1640_v46 = vadd.f32 %v3814_v10, %v1618_v11  ;;  %v1619_v57 = vmul.f32 %v2060_v25, %v3811_v2  ;;  %v1586_v27 = vpop.f32.mrb[7].mxu1 }
 0x511   : > { %v1638_v44 = vadd.f32 %v3814_v10, %v1616_v4  ;;  %v1617_v42 = vmul.f32 %v3811_v2, %v1586_v27 }
 0x512   : > { %v1672_v26 = vadd.f32 %v1656_v3, %v1640_v46  ;;  %v1641_v50 = vadd.f32 %v3814_v10, %v1619_v57 }
 0x513   : > { %v1670_v49 = vadd.f32 %v1654_v5, %v1638_v44  ;;  %v1639_v34 = vadd.f32 %v3814_v10, %v1617_v42 }
 0x514   : > { %1688 = vst [vmem:[%s3034_s6 + $0x70] sm:$0xff] %v1672_v26  ;;  %v1673_v39 = vadd.f32 %v1657_v23, %v1641_v50 }
 0x515   : > { %1686 = vst [vmem:[%s3034_s6 + $0x60] sm:$0xff] %v1670_v49  ;;  %v1671_v2 = vadd.f32 %v1655_v20, %v1639_v34 }
 0x516   : > { %1689 = vst [vmem:[%s3034_s6 + $0x78] sm:$0xff] %v1673_v39 }
 0x517   : > { %1687 = vst [vmem:[%s3034_s6 + $0x68] sm:$0xff] %v1671_v2 }
 0x518   : > { %2392 = shalt.err (!%p2389_p6)
}
 0x519   : > { %s2393_s7 = scalar_lea.hbm %s3626_s28, 2048  ;;  %s2397_s3 = scalar_lea.hbm %s3823_s10, 8192 }
 0x51a   : > { %p2394_p10 = scmp.ne.s32.totalorder %s3626_s28, %s2393_s7  ;;  %p2398_p3 = scmp.lt.u32.totalorder %s3626_s28, %s3823_s10 }
 0x51b   : > { %p2399_p7 = scmp.lt.u32.totalorder %s2397_s3, %s2393_s7  ;;  %p2401_p13 = scmp.lt.u32.totalorder %s2393_s7, %s3626_s28 }
 0x51c   : > { %p2395_p1 = pnand %p2394_p10, %p3824_p11 }
 0x51d   : > { %p2400_p9 = por %p2399_p7, %p2398_p3 }
 0x51e   : > { %p2396_p4 = pneg %p2395_p1 }
 0x51f   : > { %p2402_p0 = por %p2401_p13, %p2400_p9 }
 0x521   : > { %p2403_p5 = pnand %p2402_p0, %p2396_p4 }
 0x523   : > { %2406 = shalt.err (!%p2403_p5)
}
 0x524   : > { %s2527_s11 = smov 128   ;;  %s2528_s26 = smov 8  }
 0x525   : > { %2107 = dma.vmem_to_hbm [thread:$0]  (%p3824_p11), %s3628_s13, 2048, %s3626_s28, %s3635_s20, %s2527_s11, %s2527_s11, %s2528_s26  }
 0x526 PF: > { %s3825_s19 = sld [smem:[#allocation16_spill]]  ;;  %s3826_s29 = sld [smem:[#allocation19_spill]] }
 0x527   : > { %p2134_p8 = scmp.ge.s32.totalorder %s2509_s23, 2 }
 0x52c   : > { %s1722_s4 = sand.u32 1, %s3825_s19   ;;  %p3827_p12 = scmp.ne.s32.totalorder %s3826_s29, 0 }
 0x52d   : > { %s1723_s9 = scalar_lea.sflag [#allocation5], %s1722_s4 }
 0x52e   : > { %p2124_p2 = pnand %p2134_p8, %p3827_p12 }
 0x530   : > { %2464 = dma.done.wait (!%p2124_p2), %s1723_s9, 2048  }
 0x531   : > { %2466 = vsyncadd (!%p2124_p2), %s1723_s9, 4294965248  ;;  %s28_s23 = sadd.s32 1, %s2509_s23   ;;  %s3828_s27 = smov %s2773_s16 }
 0x532   : > { %p25_p6 = scmp.ge.s32.totalorder %s28_s23, 6   ;;  %s3829_s28 = sld [smem:[#allocation20_spill]] }
 0x533   : > { %s3830_s24 = sld [smem:[#allocation21_spill]]  ;;  %s3831_s13 = smov %s2473_s14 }
 0x534   : > { %s3832_s14 = smov %s2477_s15  ;;  %s3833_s15 = smov %s2778_s1 }
 0x535   : > { %s3834_s16 = smov %s2485_s17  ;;  %s3835_s17 = smov %s2489_s18 }
 0x536   : > { %s3836_s18 = smov %s3828_s27  ;;  %s3837_s19 = smov %s2501_s21 }
 0x537   : > { %s3838_s20 = smov %s2505_s22  ;;  %27 = sbr.rel (!%p25_p6) target bundleno = 21 (0x15), region = 140 }
 0x538   : > { %s3839_s21 = smov %s3829_s28 }
 0x539   : > { %s3840_s22 = smov %s3830_s24 }
 0x53e   :  { %1728 = vsyncpa [#allocation4], 1 }
 0x53f   :  { %1730 = vsyncpa [#allocation4 + $0x1], 1 }
 0x540   :  { %1731 = vsyncpa [#allocation7], 1 }
 0x541   :  { %1732 = vsyncpa [#allocation10], 1 }
 0x542   :  { %1733 = vsyncpa [#allocation5], 1 }
 0x543   :  { %1735 = vsyncpa [#allocation5 + $0x1], 1 }

</bundles_post_ra>
